<compile_context>
chip_gen: v7x
topology: tpu7x:2x2x1
jax: 0.10.0
libtpu: 0.0.40
codegen_flags: <defaults>
</compile_context>

<pallas_src>
import math

import jax
import jax.numpy as jnp
from jax.experimental import pallas as pl
from jax.experimental.pallas import tpu as pltpu

NEG_SLOPE = 0.01  # default negative_slope of torch.nn.functional.leaky_relu


def _leaky_relu(x):
    return jnp.where(x > 0, x, NEG_SLOPE * x)


def _round_up(n, m):
    return ((n + m - 1) // m) * m


def mlp_kernel(x_ref,
               w1, b1, w2, b2, w3, b3, w4, b4,
               w5, b5, w6, b6, w7, b7, w8, b8,
               o_ref):
    h = x_ref[...]  # bf16 tile [TILE_B, D_in]
    # 7 hidden layers: linear (bf16 x bf16 -> f32 acc) -> leaky_relu (f32)
    for w, b in ((w1, b1), (w2, b2), (w3, b3), (w4, b4),
                 (w5, b5), (w6, b6), (w7, b7)):
        z = jnp.dot(h, w[...], preferred_element_type=jnp.float32) + b[...]
        h = _leaky_relu(z).astype(jnp.bfloat16)
    # final linear (f32 logits)
    logits = jnp.dot(h, w8[...], preferred_element_type=jnp.float32) + b8[...]

    out_dim = logits.shape[-1]
    if out_dim == 2:
        # softmax over 2 classes == sigmoid of the logit difference:
        # avoids a cross-lane reduce over a 2-wide (mostly padded) lane axis.
        l0 = logits[:, 0:1]
        l1 = logits[:, 1:2]
        p0 = 1.0 / (1.0 + jnp.exp(l1 - l0))
        p1 = 1.0 - p0
        o_ref[...] = jnp.concatenate([p0, p1], axis=-1)
    else:
        m = jnp.max(logits, axis=-1, keepdims=True)
        e = jnp.exp(logits - m)
        o_ref[...] = e / jnp.sum(e, axis=-1, keepdims=True)


def binary_classification_forward(x, params, *, tile_b=256):
    """x: [B, D_in] float32; params: list of (W[in,out], b[1,out]) tuples.

    tile_b: batch tile size. Recommended 128 on v5e, 256 on v6e, 256-512 on
    v7x. For small B the tile shrinks to the (8-aligned) batch automatically.
    """
    B, D_in = x.shape
    out_dim = params[-1][0].shape[1]

    # Clamp the tile to the batch (padded to the 8-row sublane granularity).
    tile_b = _round_up(max(8, min(tile_b, _round_up(B, 8))), 8)
    B_pad = _round_up(B, tile_b)

    x_bf16 = x.astype(jnp.bfloat16)
    if B_pad != B:
        x_bf16 = jnp.pad(x_bf16, ((0, B_pad - B), (0, 0)))

    # x streams per grid step; weights/biases are full-array VMEM-resident
    # blocks with a constant index_map so they are DMA'd once, not per step.
    flat_inputs = [x_bf16]
    in_specs = [pl.BlockSpec((tile_b, D_in), lambda i: (i, 0))]
    for w, b in params:
        flat_inputs.append(w.astype(jnp.bfloat16))
        flat_inputs.append(b.astype(jnp.float32))
        in_specs.append(pl.BlockSpec(w.shape, lambda i: (0, 0)))
        in_specs.append(pl.BlockSpec(b.shape, lambda i: (0, 0)))

    out = pl.pallas_call(
        mlp_kernel,
        out_shape=jax.ShapeDtypeStruct((B_pad, out_dim), jnp.float32),
        grid=(pl.cdiv(B_pad, tile_b),),
        in_specs=in_specs,
        out_specs=pl.BlockSpec((tile_b, out_dim), lambda i: (i, 0)),
        compiler_params=pltpu.CompilerParams(
            dimension_semantics=("parallel",)),
    )(*flat_inputs)
    return out[:B]


def init_params(key, input_dimension, output_dimension=2):
    """Xavier-uniform weights (as [in, out], i.e. pre-transposed), bias = 0.01."""
    dims = [input_dimension, 256, 512, 256, 128, 64, 32, 16, output_dimension]
    params = []
    for i in range(len(dims) - 1):
        fan_in, fan_out = dims[i], dims[i + 1]
        key, sub = jax.random.split(key)
        bound = math.sqrt(6.0 / (fan_in + fan_out))
        w = jax.random.uniform(sub, (fan_in, fan_out), jnp.float32,
                               minval=-bound, maxval=bound)
        b = jnp.full((1, fan_out), 0.01, dtype=jnp.float32)
        params.append((w, b))
    return params


def reference_forward(x, params):
    """Plain-JAX f32 reference for a sanity check."""
    h = x
    for i, (w, b) in enumerate(params):
        h = h @ w + b
        if i < len(params) - 1:
            h = _leaky_relu(h)
    return jax.nn.softmax(h, axis=1)


if __name__ == "__main__":
    key = jax.random.PRNGKey(0)
    B, D_in = 16, 32

    k_x, k_p = jax.random.split(key)
    x = jax.random.normal(k_x, (B, D_in), dtype=jnp.float32)
    params = init_params(k_p, D_in, output_dimension=2)

    # tile_b=8 at this tiny demo size -> a 2-step grid, exercising the
    # batch-streaming pipeline; production sizes would use 128/256/512.
    out = binary_classification_forward(x, params, tile_b=8)
    out = jax.block_until_ready(out)

    ref = reference_forward(x, params)
    assert out.shape == (B, 2)
    # rows sum to 1 exactly by construction of the 2-class sigmoid form
    assert jnp.allclose(jnp.sum(out, axis=1), 1.0, atol=1e-5)
    # bf16 inputs + f32 accumulation vs f32 reference -> looser tolerance
    assert jnp.allclose(out, ref, atol=5e-2, rtol=5e-2), "mismatch vs reference"

    print("KERNEL_OK")
</pallas_src>

<mosaic_0001>
module attributes {stable_mosaic.version = 11 : i64} {
  func.func @mlp_kernel(%arg0: i32, %arg1: memref<8x32xbf16, #tpu.memory_space<vmem>>, %arg2: memref<32x256xbf16, #tpu.memory_space<vmem>>, %arg3: memref<1x256xf32, #tpu.memory_space<vmem>>, %arg4: memref<256x512xbf16, #tpu.memory_space<vmem>>, %arg5: memref<1x512xf32, #tpu.memory_space<vmem>>, %arg6: memref<512x256xbf16, #tpu.memory_space<vmem>>, %arg7: memref<1x256xf32, #tpu.memory_space<vmem>>, %arg8: memref<256x128xbf16, #tpu.memory_space<vmem>>, %arg9: memref<1x128xf32, #tpu.memory_space<vmem>>, %arg10: memref<128x64xbf16, #tpu.memory_space<vmem>>, %arg11: memref<1x64xf32, #tpu.memory_space<vmem>>, %arg12: memref<64x32xbf16, #tpu.memory_space<vmem>>, %arg13: memref<1x32xf32, #tpu.memory_space<vmem>>, %arg14: memref<32x16xbf16, #tpu.memory_space<vmem>>, %arg15: memref<1x16xf32, #tpu.memory_space<vmem>>, %arg16: memref<16x2xbf16, #tpu.memory_space<vmem>>, %arg17: memref<1x2xf32, #tpu.memory_space<vmem>>, %arg18: memref<8x2xf32, #tpu.memory_space<vmem>>) attributes {dimension_semantics = [#tpu.dimension_semantics<parallel>], iteration_bounds = array<i64: 2>, scalar_prefetch = 0 : i64, scratch_operands = 0 : i64, tpu.core_type = #tpu.core_type<tc>, window_params = [{transform_indices = @transform_0, window_bounds = array<i64: 8, 32>}, {pipeline_mode = #tpu.pipeline_mode<synchronous>, transform_indices = @transform_1, window_bounds = array<i64: 32, 256>}, {pipeline_mode = #tpu.pipeline_mode<synchronous>, transform_indices = @transform_2, window_bounds = array<i64: 1, 256>}, {pipeline_mode = #tpu.pipeline_mode<synchronous>, transform_indices = @transform_3, window_bounds = array<i64: 256, 512>}, {pipeline_mode = #tpu.pipeline_mode<synchronous>, transform_indices = @transform_4, window_bounds = array<i64: 1, 512>}, {pipeline_mode = #tpu.pipeline_mode<synchronous>, transform_indices = @transform_5, window_bounds = array<i64: 512, 256>}, {pipeline_mode = #tpu.pipeline_mode<synchronous>, transform_indices = @transform_6, window_bounds = array<i64: 1, 256>}, {pipeline_mode = #tpu.pipeline_mode<synchronous>, transform_indices = @transform_7, window_bounds = array<i64: 256, 128>}, {pipeline_mode = #tpu.pipeline_mode<synchronous>, transform_indices = @transform_8, window_bounds = array<i64: 1, 128>}, {pipeline_mode = #tpu.pipeline_mode<synchronous>, transform_indices = @transform_9, window_bounds = array<i64: 128, 64>}, {pipeline_mode = #tpu.pipeline_mode<synchronous>, transform_indices = @transform_10, window_bounds = array<i64: 1, 64>}, {pipeline_mode = #tpu.pipeline_mode<synchronous>, transform_indices = @transform_11, window_bounds = array<i64: 64, 32>}, {pipeline_mode = #tpu.pipeline_mode<synchronous>, transform_indices = @transform_12, window_bounds = array<i64: 1, 32>}, {pipeline_mode = #tpu.pipeline_mode<synchronous>, transform_indices = @transform_13, window_bounds = array<i64: 32, 16>}, {pipeline_mode = #tpu.pipeline_mode<synchronous>, transform_indices = @transform_14, window_bounds = array<i64: 1, 16>}, {pipeline_mode = #tpu.pipeline_mode<synchronous>, transform_indices = @transform_15, window_bounds = array<i64: 16, 2>}, {pipeline_mode = #tpu.pipeline_mode<synchronous>, transform_indices = @transform_16, window_bounds = array<i64: 1, 2>}, {transform_indices = @transform_17, window_bounds = array<i64: 8, 2>}]} {
    %c0 = arith.constant 0 : index
    %c0_0 = arith.constant 0 : index
    %0 = vector.load %arg1[%c0, %c0_0] : memref<8x32xbf16, #tpu.memory_space<vmem>>, vector<8x32xbf16>
    %c0_1 = arith.constant 0 : index
    %c0_2 = arith.constant 0 : index
    %1 = vector.load %arg2[%c0_1, %c0_2] : memref<32x256xbf16, #tpu.memory_space<vmem>>, vector<32x256xbf16>
    %cst = arith.constant dense<0.000000e+00> : vector<8x256xf32>
    %2 = tpu.matmul %0, %1, %cst {dimension_numbers = #tpu.dot_dimension_numbers<[1], [0], [0], [1], [0, 0, 1, 1], [], []>} : vector<8x32xbf16>, vector<32x256xbf16>, vector<8x256xf32> -> vector<8x256xf32>
    %c0_3 = arith.constant 0 : index
    %c0_4 = arith.constant 0 : index
    %3 = vector.load %arg3[%c0_3, %c0_4] : memref<1x256xf32, #tpu.memory_space<vmem>>, vector<1x256xf32>
    %4 = vector.broadcast %3 : vector<1x256xf32> to vector<8x256xf32>
    %5 = arith.addf %2, %4 : vector<8x256xf32>
    %cst_5 = arith.constant 0.000000e+00 : f32
    %6 = vector.broadcast %cst_5 : f32 to vector<8x256xf32>
    %7 = arith.cmpf ogt, %5, %6 : vector<8x256xf32>
    %cst_6 = arith.constant 0.00999999977 : f32
    %8 = vector.broadcast %cst_6 : f32 to vector<8x256xf32>
    %9 = arith.mulf %8, %5 : vector<8x256xf32>
    %10 = arith.select %7, %5, %9 : vector<8x256xi1>, vector<8x256xf32>
    %11 = arith.truncf %10 : vector<8x256xf32> to vector<8x256xbf16>
    %c0_7 = arith.constant 0 : index
    %c0_8 = arith.constant 0 : index
    %12 = vector.load %arg4[%c0_7, %c0_8] : memref<256x512xbf16, #tpu.memory_space<vmem>>, vector<256x512xbf16>
    %cst_9 = arith.constant dense<0.000000e+00> : vector<8x512xf32>
    %13 = tpu.matmul %11, %12, %cst_9 {dimension_numbers = #tpu.dot_dimension_numbers<[1], [0], [0], [1], [0, 0, 1, 1], [], []>} : vector<8x256xbf16>, vector<256x512xbf16>, vector<8x512xf32> -> vector<8x512xf32>
    %c0_10 = arith.constant 0 : index
    %c0_11 = arith.constant 0 : index
    %14 = vector.load %arg5[%c0_10, %c0_11] : memref<1x512xf32, #tpu.memory_space<vmem>>, vector<1x512xf32>
    %15 = vector.broadcast %14 : vector<1x512xf32> to vector<8x512xf32>
    %16 = arith.addf %13, %15 : vector<8x512xf32>
    %cst_12 = arith.constant 0.000000e+00 : f32
    %17 = vector.broadcast %cst_12 : f32 to vector<8x512xf32>
    %18 = arith.cmpf ogt, %16, %17 : vector<8x512xf32>
    %cst_13 = arith.constant 0.00999999977 : f32
    %19 = vector.broadcast %cst_13 : f32 to vector<8x512xf32>
    %20 = arith.mulf %19, %16 : vector<8x512xf32>
    %21 = arith.select %18, %16, %20 : vector<8x512xi1>, vector<8x512xf32>
    %22 = arith.truncf %21 : vector<8x512xf32> to vector<8x512xbf16>
    %c0_14 = arith.constant 0 : index
    %c0_15 = arith.constant 0 : index
    %23 = vector.load %arg6[%c0_14, %c0_15] : memref<512x256xbf16, #tpu.memory_space<vmem>>, vector<512x256xbf16>
    %cst_16 = arith.constant dense<0.000000e+00> : vector<8x256xf32>
    %24 = tpu.matmul %22, %23, %cst_16 {dimension_numbers = #tpu.dot_dimension_numbers<[1], [0], [0], [1], [0, 0, 1, 1], [], []>} : vector<8x512xbf16>, vector<512x256xbf16>, vector<8x256xf32> -> vector<8x256xf32>
    %c0_17 = arith.constant 0 : index
    %c0_18 = arith.constant 0 : index
    %25 = vector.load %arg7[%c0_17, %c0_18] : memref<1x256xf32, #tpu.memory_space<vmem>>, vector<1x256xf32>
    %26 = vector.broadcast %25 : vector<1x256xf32> to vector<8x256xf32>
    %27 = arith.addf %24, %26 : vector<8x256xf32>
    %cst_19 = arith.constant 0.000000e+00 : f32
    %28 = vector.broadcast %cst_19 : f32 to vector<8x256xf32>
    %29 = arith.cmpf ogt, %27, %28 : vector<8x256xf32>
    %cst_20 = arith.constant 0.00999999977 : f32
    %30 = vector.broadcast %cst_20 : f32 to vector<8x256xf32>
    %31 = arith.mulf %30, %27 : vector<8x256xf32>
    %32 = arith.select %29, %27, %31 : vector<8x256xi1>, vector<8x256xf32>
    %33 = arith.truncf %32 : vector<8x256xf32> to vector<8x256xbf16>
    %c0_21 = arith.constant 0 : index
    %c0_22 = arith.constant 0 : index
    %34 = vector.load %arg8[%c0_21, %c0_22] : memref<256x128xbf16, #tpu.memory_space<vmem>>, vector<256x128xbf16>
    %cst_23 = arith.constant dense<0.000000e+00> : vector<8x128xf32>
    %35 = tpu.matmul %33, %34, %cst_23 {dimension_numbers = #tpu.dot_dimension_numbers<[1], [0], [0], [1], [0, 0, 1, 1], [], []>} : vector<8x256xbf16>, vector<256x128xbf16>, vector<8x128xf32> -> vector<8x128xf32>
    %c0_24 = arith.constant 0 : index
    %c0_25 = arith.constant 0 : index
    %36 = vector.load %arg9[%c0_24, %c0_25] : memref<1x128xf32, #tpu.memory_space<vmem>>, vector<1x128xf32>
    %37 = vector.broadcast %36 : vector<1x128xf32> to vector<8x128xf32>
    %38 = arith.addf %35, %37 : vector<8x128xf32>
    %cst_26 = arith.constant 0.000000e+00 : f32
    %39 = vector.broadcast %cst_26 : f32 to vector<8x128xf32>
    %40 = arith.cmpf ogt, %38, %39 : vector<8x128xf32>
    %cst_27 = arith.constant 0.00999999977 : f32
    %41 = vector.broadcast %cst_27 : f32 to vector<8x128xf32>
    %42 = arith.mulf %41, %38 : vector<8x128xf32>
    %43 = arith.select %40, %38, %42 : vector<8x128xi1>, vector<8x128xf32>
    %44 = arith.truncf %43 : vector<8x128xf32> to vector<8x128xbf16>
    %c0_28 = arith.constant 0 : index
    %c0_29 = arith.constant 0 : index
    %45 = vector.load %arg10[%c0_28, %c0_29] : memref<128x64xbf16, #tpu.memory_space<vmem>>, vector<128x64xbf16>
    %cst_30 = arith.constant dense<0.000000e+00> : vector<8x64xf32>
    %46 = tpu.matmul %44, %45, %cst_30 {dimension_numbers = #tpu.dot_dimension_numbers<[1], [0], [0], [1], [0, 0, 1, 1], [], []>} : vector<8x128xbf16>, vector<128x64xbf16>, vector<8x64xf32> -> vector<8x64xf32>
    %c0_31 = arith.constant 0 : index
    %c0_32 = arith.constant 0 : index
    %47 = vector.load %arg11[%c0_31, %c0_32] : memref<1x64xf32, #tpu.memory_space<vmem>>, vector<1x64xf32>
    %48 = vector.broadcast %47 : vector<1x64xf32> to vector<8x64xf32>
    %49 = arith.addf %46, %48 : vector<8x64xf32>
    %cst_33 = arith.constant 0.000000e+00 : f32
    %50 = vector.broadcast %cst_33 : f32 to vector<8x64xf32>
    %51 = arith.cmpf ogt, %49, %50 : vector<8x64xf32>
    %cst_34 = arith.constant 0.00999999977 : f32
    %52 = vector.broadcast %cst_34 : f32 to vector<8x64xf32>
    %53 = arith.mulf %52, %49 : vector<8x64xf32>
    %54 = arith.select %51, %49, %53 : vector<8x64xi1>, vector<8x64xf32>
    %55 = arith.truncf %54 : vector<8x64xf32> to vector<8x64xbf16>
    %c0_35 = arith.constant 0 : index
    %c0_36 = arith.constant 0 : index
    %56 = vector.load %arg12[%c0_35, %c0_36] : memref<64x32xbf16, #tpu.memory_space<vmem>>, vector<64x32xbf16>
    %cst_37 = arith.constant dense<0.000000e+00> : vector<8x32xf32>
    %57 = tpu.matmul %55, %56, %cst_37 {dimension_numbers = #tpu.dot_dimension_numbers<[1], [0], [0], [1], [0, 0, 1, 1], [], []>} : vector<8x64xbf16>, vector<64x32xbf16>, vector<8x32xf32> -> vector<8x32xf32>
    %c0_38 = arith.constant 0 : index
    %c0_39 = arith.constant 0 : index
    %58 = vector.load %arg13[%c0_38, %c0_39] : memref<1x32xf32, #tpu.memory_space<vmem>>, vector<1x32xf32>
    %59 = vector.broadcast %58 : vector<1x32xf32> to vector<8x32xf32>
    %60 = arith.addf %57, %59 : vector<8x32xf32>
    %cst_40 = arith.constant 0.000000e+00 : f32
    %61 = vector.broadcast %cst_40 : f32 to vector<8x32xf32>
    %62 = arith.cmpf ogt, %60, %61 : vector<8x32xf32>
    %cst_41 = arith.constant 0.00999999977 : f32
    %63 = vector.broadcast %cst_41 : f32 to vector<8x32xf32>
    %64 = arith.mulf %63, %60 : vector<8x32xf32>
    %65 = arith.select %62, %60, %64 : vector<8x32xi1>, vector<8x32xf32>
    %66 = arith.truncf %65 : vector<8x32xf32> to vector<8x32xbf16>
    %c0_42 = arith.constant 0 : index
    %c0_43 = arith.constant 0 : index
    %67 = vector.load %arg14[%c0_42, %c0_43] : memref<32x16xbf16, #tpu.memory_space<vmem>>, vector<32x16xbf16>
    %cst_44 = arith.constant dense<0.000000e+00> : vector<8x16xf32>
    %68 = tpu.matmul %66, %67, %cst_44 {dimension_numbers = #tpu.dot_dimension_numbers<[1], [0], [0], [1], [0, 0, 1, 1], [], []>} : vector<8x32xbf16>, vector<32x16xbf16>, vector<8x16xf32> -> vector<8x16xf32>
    %c0_45 = arith.constant 0 : index
    %c0_46 = arith.constant 0 : index
    %69 = vector.load %arg15[%c0_45, %c0_46] : memref<1x16xf32, #tpu.memory_space<vmem>>, vector<1x16xf32>
    %70 = vector.broadcast %69 : vector<1x16xf32> to vector<8x16xf32>
    %71 = arith.addf %68, %70 : vector<8x16xf32>
    %cst_47 = arith.constant 0.000000e+00 : f32
    %72 = vector.broadcast %cst_47 : f32 to vector<8x16xf32>
    %73 = arith.cmpf ogt, %71, %72 : vector<8x16xf32>
    %cst_48 = arith.constant 0.00999999977 : f32
    %74 = vector.broadcast %cst_48 : f32 to vector<8x16xf32>
    %75 = arith.mulf %74, %71 : vector<8x16xf32>
    %76 = arith.select %73, %71, %75 : vector<8x16xi1>, vector<8x16xf32>
    %77 = arith.truncf %76 : vector<8x16xf32> to vector<8x16xbf16>
    %c0_49 = arith.constant 0 : index
    %c0_50 = arith.constant 0 : index
    %78 = vector.load %arg16[%c0_49, %c0_50] : memref<16x2xbf16, #tpu.memory_space<vmem>>, vector<16x2xbf16>
    %cst_51 = arith.constant dense<0.000000e+00> : vector<8x2xf32>
    %79 = tpu.matmul %77, %78, %cst_51 {dimension_numbers = #tpu.dot_dimension_numbers<[1], [0], [0], [1], [0, 0, 1, 1], [], []>} : vector<8x16xbf16>, vector<16x2xbf16>, vector<8x2xf32> -> vector<8x2xf32>
    %c0_52 = arith.constant 0 : index
    %c0_53 = arith.constant 0 : index
    %80 = vector.load %arg17[%c0_52, %c0_53] : memref<1x2xf32, #tpu.memory_space<vmem>>, vector<1x2xf32>
    %81 = vector.broadcast %80 : vector<1x2xf32> to vector<8x2xf32>
    %82 = arith.addf %79, %81 : vector<8x2xf32>
    %83 = vector.extract_strided_slice %82 {offsets = [0, 0], sizes = [8, 1], strides = [1, 1]} : vector<8x2xf32> to vector<8x1xf32>
    %84 = vector.extract_strided_slice %82 {offsets = [0, 1], sizes = [8, 1], strides = [1, 1]} : vector<8x2xf32> to vector<8x1xf32>
    %85 = arith.subf %84, %83 : vector<8x1xf32>
    %86 = math.exp %85 : vector<8x1xf32>
    %cst_54 = arith.constant 1.000000e+00 : f32
    %87 = vector.broadcast %cst_54 : f32 to vector<8x1xf32>
    %88 = arith.addf %87, %86 : vector<8x1xf32>
    %cst_55 = arith.constant 1.000000e+00 : f32
    %89 = vector.broadcast %cst_55 : f32 to vector<8x1xf32>
    %90 = arith.divf %89, %88 : vector<8x1xf32>
    %cst_56 = arith.constant 1.000000e+00 : f32
    %91 = vector.broadcast %cst_56 : f32 to vector<8x1xf32>
    %92 = arith.subf %91, %90 : vector<8x1xf32>
    %93 = tpu.concatenate %90, %92 in 1 : vector<8x1xf32>, vector<8x1xf32> -> vector<8x2xf32>
    %c0_57 = arith.constant 0 : index
    %c0_58 = arith.constant 0 : index
    %94 = vector.load %arg18[%c0_57, %c0_58] : memref<8x2xf32, #tpu.memory_space<vmem>>, vector<8x2xf32>
    tpu.vector_store %arg18[%c0_57, %c0_58], %93 {strides = array<i32>} : memref<8x2xf32, #tpu.memory_space<vmem>>, vector<8x2xf32>,
    return
  }
  func.func @transform_0(%arg0: i32) -> (i32, i32) {
    %c0_i32 = arith.constant 0 : i32
    %c0_i32_0 = arith.constant 0 : i32
    return %arg0, %c0_i32 : i32, i32
  }
  func.func @transform_1(%arg0: i32) -> (i32, i32) {
    %c0_i32 = arith.constant 0 : i32
    %c0_i32_0 = arith.constant 0 : i32
    %c0_i32_1 = arith.constant 0 : i32
    return %c0_i32, %c0_i32_0 : i32, i32
  }
  func.func @transform_2(%arg0: i32) -> (i32, i32) {
    %c0_i32 = arith.constant 0 : i32
    %c0_i32_0 = arith.constant 0 : i32
    %c0_i32_1 = arith.constant 0 : i32
    return %c0_i32, %c0_i32_0 : i32, i32
  }
  func.func @transform_3(%arg0: i32) -> (i32, i32) {
    %c0_i32 = arith.constant 0 : i32
    %c0_i32_0 = arith.constant 0 : i32
    %c0_i32_1 = arith.constant 0 : i32
    return %c0_i32, %c0_i32_0 : i32, i32
  }
  func.func @transform_4(%arg0: i32) -> (i32, i32) {
    %c0_i32 = arith.constant 0 : i32
    %c0_i32_0 = arith.constant 0 : i32
    %c0_i32_1 = arith.constant 0 : i32
    return %c0_i32, %c0_i32_0 : i32, i32
  }
  func.func @transform_5(%arg0: i32) -> (i32, i32) {
    %c0_i32 = arith.constant 0 : i32
    %c0_i32_0 = arith.constant 0 : i32
    %c0_i32_1 = arith.constant 0 : i32
    return %c0_i32, %c0_i32_0 : i32, i32
  }
  func.func @transform_6(%arg0: i32) -> (i32, i32) {
    %c0_i32 = arith.constant 0 : i32
    %c0_i32_0 = arith.constant 0 : i32
    %c0_i32_1 = arith.constant 0 : i32
    return %c0_i32, %c0_i32_0 : i32, i32
  }
  func.func @transform_7(%arg0: i32) -> (i32, i32) {
    %c0_i32 = arith.constant 0 : i32
    %c0_i32_0 = arith.constant 0 : i32
    %c0_i32_1 = arith.constant 0 : i32
    return %c0_i32, %c0_i32_0 : i32, i32
  }
  func.func @transform_8(%arg0: i32) -> (i32, i32) {
    %c0_i32 = arith.constant 0 : i32
    %c0_i32_0 = arith.constant 0 : i32
    %c0_i32_1 = arith.constant 0 : i32
    return %c0_i32, %c0_i32_0 : i32, i32
  }
  func.func @transform_9(%arg0: i32) -> (i32, i32) {
    %c0_i32 = arith.constant 0 : i32
    %c0_i32_0 = arith.constant 0 : i32
    %c0_i32_1 = arith.constant 0 : i32
    return %c0_i32, %c0_i32_0 : i32, i32
  }
  func.func @transform_10(%arg0: i32) -> (i32, i32) {
    %c0_i32 = arith.constant 0 : i32
    %c0_i32_0 = arith.constant 0 : i32
    %c0_i32_1 = arith.constant 0 : i32
    return %c0_i32, %c0_i32_0 : i32, i32
  }
  func.func @transform_11(%arg0: i32) -> (i32, i32) {
    %c0_i32 = arith.constant 0 : i32
    %c0_i32_0 = arith.constant 0 : i32
    %c0_i32_1 = arith.constant 0 : i32
    return %c0_i32, %c0_i32_0 : i32, i32
  }
  func.func @transform_12(%arg0: i32) -> (i32, i32) {
    %c0_i32 = arith.constant 0 : i32
    %c0_i32_0 = arith.constant 0 : i32
    %c0_i32_1 = arith.constant 0 : i32
    return %c0_i32, %c0_i32_0 : i32, i32
  }
  func.func @transform_13(%arg0: i32) -> (i32, i32) {
    %c0_i32 = arith.constant 0 : i32
    %c0_i32_0 = arith.constant 0 : i32
    %c0_i32_1 = arith.constant 0 : i32
    return %c0_i32, %c0_i32_0 : i32, i32
  }
  func.func @transform_14(%arg0: i32) -> (i32, i32) {
    %c0_i32 = arith.constant 0 : i32
    %c0_i32_0 = arith.constant 0 : i32
    %c0_i32_1 = arith.constant 0 : i32
    return %c0_i32, %c0_i32_0 : i32, i32
  }
  func.func @transform_15(%arg0: i32) -> (i32, i32) {
    %c0_i32 = arith.constant 0 : i32
    %c0_i32_0 = arith.constant 0 : i32
    %c0_i32_1 = arith.constant 0 : i32
    return %c0_i32, %c0_i32_0 : i32, i32
  }
  func.func @transform_16(%arg0: i32) -> (i32, i32) {
    %c0_i32 = arith.constant 0 : i32
    %c0_i32_0 = arith.constant 0 : i32
    %c0_i32_1 = arith.constant 0 : i32
    return %c0_i32, %c0_i32_0 : i32, i32
  }
  func.func @transform_17(%arg0: i32) -> (i32, i32) {
    %c0_i32 = arith.constant 0 : i32
    %c0_i32_0 = arith.constant 0 : i32
    return %arg0, %c0_i32 : i32, i32
  }
}

</mosaic_0001>

<bundles_post_ra>
// kernel: tpu_custom_call.1
= control target key start
LH: loop header
LB: loop body
LE: loop exit
PB: predicated region body
PF: predicated region fallthrough
CT: control target
= control target key end

     0   :  { %s3788_s0 = inlined_call_operand.hbm [shape: bf16[16,32], index: 0, kind: input, shape index: {}]   ;;  %s3789_s1 = inlined_call_operand.vmem [shape: bf16[32,256], index: 1, kind: input, shape index: {}]   ;;  %s3790_s2 = inlined_call_operand.vmem [shape: f32[1,256], index: 2, kind: input, shape index: {}]   ;;  %s3791_s3 = inlined_call_operand.hbm [shape: bf16[256,512], index: 3, kind: input, shape index: {}]   ;;  %s3792_s4 = inlined_call_operand.hbm [shape: f32[1,512], index: 4, kind: input, shape index: {}]   ;;  %s3793_s5 = inlined_call_operand.hbm [shape: bf16[512,256], index: 5, kind: input, shape index: {}]   ;;  %s3794_s6 = inlined_call_operand.hbm [shape: f32[1,256], index: 6, kind: input, shape index: {}]   ;;  %s3795_s7 = inlined_call_operand.vmem [shape: bf16[256,128], index: 7, kind: input, shape index: {}]   ;;  %s3796_s8 = inlined_call_operand.hbm [shape: f32[1,128], index: 8, kind: input, shape index: {}]   ;;  %s3797_s9 = inlined_call_operand.vmem [shape: bf16[128,64], index: 9, kind: input, shape index: {}]   ;;  %s3798_s10 = inlined_call_operand.hbm [shape: f32[1,64], index: 10, kind: input, shape index: {}]   ;;  %s3799_s11 = inlined_call_operand.vmem [shape: bf16[64,32], index: 11, kind: input, shape index: {}]   ;;  %s3800_s12 = inlined_call_operand.vmem [shape: f32[1,32], index: 12, kind: input, shape index: {}]   ;;  %s3801_s13 = inlined_call_operand.vmem [shape: bf16[32,16], index: 13, kind: input, shape index: {}]   ;;  %s3802_s14 = inlined_call_operand.vmem [shape: f32[1,16], index: 14, kind: input, shape index: {}]   ;;  %s3803_s15 = inlined_call_operand.vmem [shape: bf16[16,2], index: 15, kind: input, shape index: {}]   ;;  %s3804_s16 = inlined_call_operand.vmem [shape: f32[1,2], index: 16, kind: input, shape index: {}]   ;;  %s3805_s17 = inlined_call_operand.vmem [shape: f32[16,2], index: 17, kind: output, shape index: {}]  }
   0x1   :  { %3812 = sst [smem:[#allocation17_spill]] %s3788_s0 }
   0x2   :  { %3813 = sst [smem:[#allocation18_spill]] %s3789_s1 }
   0x3   :  { %3814 = sst [smem:[#allocation19_spill]] %s3799_s11 }
   0x4   :  { %3815 = sst [smem:[#allocation20_spill]] %s3800_s12 }
   0x5   :  { %3816 = sst [smem:[#allocation21_spill]] %s3801_s13 }
   0x6   :  { %3817 = sst [smem:[#allocation22_spill]] %s3802_s14 }
   0x7   :  { %3818 = sst [smem:[#allocation23_spill]] %s3803_s15 }
   0x8   :  { %3819 = sst [smem:[#allocation24_spill]] %s3804_s16 }
   0x9   :  { %3820 = sst [smem:[#allocation25_spill]] %s3805_s17 }
   0xa   :  { %22 = vsyncpa [#allocation3], 0 }
   0xb   :  { %24 = vsyncpa [#allocation3 + $0x1], 0 }
   0xc   :  { %25 = vsyncpa [#allocation5], 0 }
   0xd   :  { %26 = vsyncpa [#allocation8], 0 }
   0xe   :  { %27 = vsyncpa [#allocation11], 0  ;;  %s3356_s24 = smov 0   ;;  %s3358_s25 = smov 0  }
   0xf   :  { %s3360_s26 = smov 0   ;;  %s3362_s27 = smov 0  }
  0x10 LB: > { %s3250_s28 = smov [#allocation4]   ;;  %s3377_s0 = sadd.s32 4294967295, %s3248_s27   ;;  %s3248_s27 = sphi %s3362_s27, %s3846_s27   ;;  %s3244_s26 = sphi %s3360_s26, %s3845_s26   ;;  %s3240_s25 = sphi %s3358_s25, %s3844_s25   ;;  %s3236_s24 = sphi %s3356_s24, %s3843_s24  }
  0x11   : > { %s444_s29 = sshll.u32 %s3250_s28, 4  ;;  %p2376_p0 = scmp.ge.s32.totalorder %s3248_s27, 1  ;;  %s3382_s29 = int_to_ptr.vmem [resolvable:$true] %s444_s29 }
  0x12   : > { %p3810_p1 = scmp.eq.s32.totalorder %s3377_s0, 0  ;;  %p426_p2 = scmp.lt.s32.totalorder %s3248_s27, 3 }
  0x13   : > { %s3251_s18 = smov [#allocation7]   ;;  %s3252_s20 = smov [#allocation10]  }
  0x14   : > { %p3384_p3 = pnand %p2376_p0, %p426_p2  ;;  %s468_s19 = sshll.u32 %s3251_s18, 4  ;;  %s3396_s19 = int_to_ptr.vmem [resolvable:$true] %s468_s19 }
  0x15   : > { %s3398_s21 = sshll.u32 %s3252_s20, 4  ;;  %s3004_s28 = scalar_lea.hbm %s3791_s3, 8192  ;;  %s497_s21 = int_to_ptr.vmem [resolvable:$true] %s3398_s21 }
  0x16   : > { %s3821_s30 = scalar_select %p3384_p3, 1, 0 }
  0x17   : > { %p2688_p4 = pneg %p3384_p3  ;;  %p3005_p6 = scmp.ne.s32.totalorder %s3791_s3, %s3004_s28 }
  0x18   : > { %p3011_p10 = scmp.lt.u32.totalorder %s3004_s28, %s3791_s3 }
  0x19   : > { %p3392_p5 = pnand %p2688_p4, %p3810_p1 }
  0x1b   : > { %p3408_p7 = pneg %p3392_p5 }
  0x1d   : > { %p3007_p8 = pnand %p3408_p7, %p3005_p6 }
  0x1f   : > { %p3008_p9 = pneg %p3007_p8 }
  0x21   : > { %p3013_p11 = pnand %p3011_p10, %p3008_p9 }
  0x23   : > { %3016 = shalt.err (!%p3013_p11)
}
  0x24   : > { %s3017_s16 = scalar_lea.vmem %s3382_s29, 8192  ;;  %p3025_p2 = scmp.lt.s32.totalorder %s3382_s29, %s3382_s29 }
  0x25   : > { %p3018_p12 = scmp.ne.s32.totalorder %s3382_s29, %s3017_s16  ;;  %p3026_p4 = scmp.lt.s32.totalorder %s3017_s16, %s3017_s16 }
  0x27   : > { %p3020_p13 = pnand %p3018_p12, %p3408_p7  ;;  %p3027_p6 = por %p3026_p4, %p3025_p2 }
  0x29   : > { %p3021_p0 = pneg %p3020_p13 }
  0x2b   : > { %p3028_p8 = pnand %p3027_p6, %p3021_p0 }
  0x2d   : > { %3031 = shalt.err (!%p3028_p8)
}
  0x2e   : > { %s3253_s17 = smov 256   ;;  %s3254_s14 = smov 16  }
  0x2f   : > { %2691 = dma.hbm_to_vmem [thread:$0]  (!%p3392_p5), %s3791_s3, 8192, %s3382_s29, [#allocation5], %s3253_s17, %s3253_s17, %s3254_s14  }
  0x30   : > { %s3032_s15 = scalar_lea.hbm %s3793_s5, 8192 }
  0x31   : > { %p3033_p9 = scmp.ne.s32.totalorder %s3793_s5, %s3032_s15  ;;  %p3039_p12 = scmp.lt.u32.totalorder %s3032_s15, %s3793_s5 }
  0x33   : > { %p3035_p10 = pnand %p3033_p9, %p3408_p7 }
  0x35   : > { %p3036_p11 = pneg %p3035_p10 }
  0x37   : > { %p3041_p13 = pnand %p3039_p12, %p3036_p11 }
  0x39   : > { %3044 = shalt.err (!%p3041_p13)
}
  0x3a   : > { %s3045_s29 = scalar_lea.vmem %s3396_s19, 8192  ;;  %p3053_p6 = scmp.lt.s32.totalorder %s3396_s19, %s3396_s19 }
  0x3b   : > { %p3046_p0 = scmp.ne.s32.totalorder %s3396_s19, %s3045_s29  ;;  %p3054_p8 = scmp.lt.s32.totalorder %s3045_s29, %s3045_s29 }
  0x3d   : > { %p3048_p2 = pnand %p3046_p0, %p3408_p7  ;;  %p3055_p9 = por %p3054_p8, %p3053_p6 }
  0x3f   : > { %p3049_p4 = pneg %p3048_p2 }
  0x41   : > { %p3056_p10 = pnand %p3055_p9, %p3049_p4 }
  0x43   : > { %3059 = shalt.err (!%p3056_p10)
}
  0x44   : > { %s3255_s12 = smov 128   ;;  %s3256_s11 = smov 8  }
  0x45   : > { %2697 = dma.hbm_to_vmem [thread:$0]  (!%p3392_p5), %s3793_s5, 8192, %s3396_s19, [#allocation8], %s3255_s12, %s3255_s12, %s3256_s11  }
  0x46   : > { %s3060_s22 = scalar_lea.hbm %s3796_s8, 16 }
  0x47   : > { %p3061_p11 = scmp.ne.s32.totalorder %s3796_s8, %s3060_s22  ;;  %p3067_p0 = scmp.lt.u32.totalorder %s3060_s22, %s3796_s8 }
  0x49   : > { %p3063_p12 = pnand %p3061_p11, %p3408_p7 }
  0x4b   : > { %p3064_p13 = pneg %p3063_p12 }
  0x4d   : > { %p3069_p2 = pnand %p3067_p0, %p3064_p13 }
  0x4f   : > { %3072 = shalt.err (!%p3069_p2)
}
  0x50   : > { %s3073_s29 = scalar_lea.vmem %s497_s21, 16  ;;  %s3080_s19 = scalar_lea.vmem %s497_s21, 32 }
  0x51   : > { %p3074_p4 = scmp.ne.s32.totalorder %s497_s21, %s3073_s29  ;;  %p3081_p9 = scmp.lt.s32.totalorder %s497_s21, %s497_s21 }
  0x52   : > { %p3082_p10 = scmp.lt.s32.totalorder %s3080_s19, %s3073_s29 }
  0x53   : > { %p3076_p6 = pnand %p3074_p4, %p3408_p7 }
  0x54   : > { %p3083_p1 = por %p3082_p10, %p3081_p9 }
  0x55   : > { %p3077_p8 = pneg %p3076_p6 }
  0x57   : > { %p3084_p3 = pnand %p3083_p1, %p3077_p8 }
  0x59   : > { %3087 = shalt.err (!%p3084_p3)
}
  0x5a   : > { %2703 = dma.hbm_to_vmem [thread:$0]  (!%p3392_p5), %s3796_s8, 16, %s497_s21, [#allocation11]  }
  0x5b   : > { %s3257_s13 = smov [#allocation6]   ;;  %s3258_s17 = smov [#allocation9]  }
  0x5c   : > { %s458_s15 = sshll.u32 %s3257_s13, 4  ;;  %s482_s14 = sshll.u32 %s3258_s17, 4  ;;  %s459_s15 = int_to_ptr.vmem [resolvable:$true] %s458_s15  ;;  %s483_s14 = int_to_ptr.vmem [resolvable:$true] %s482_s14 }
  0x5d   : > { %s3088_s28 = scalar_lea.hbm %s3792_s4, 64 }
  0x5e   : > { %p3089_p1 = scmp.ne.s32.totalorder %s3792_s4, %s3088_s28  ;;  %p3095_p12 = scmp.lt.u32.totalorder %s3088_s28, %s3792_s4 }
  0x60   : > { %p3091_p3 = pnand %p3089_p1, %p3408_p7 }
  0x62   : > { %p3092_p11 = pneg %p3091_p3 }
  0x64   : > { %p3097_p13 = pnand %p3095_p12, %p3092_p11 }
  0x66   : > { %3100 = shalt.err (!%p3097_p13)
}
  0x67   : > { %s3101_s21 = scalar_lea.vmem %s459_s15, 64  ;;  %p3109_p6 = scmp.lt.s32.totalorder %s459_s15, %s459_s15 }
  0x68   : > { %p3102_p0 = scmp.ne.s32.totalorder %s459_s15, %s3101_s21  ;;  %p3110_p8 = scmp.lt.s32.totalorder %s3101_s21, %s3101_s21 }
  0x6a   : > { %p3104_p2 = pnand %p3102_p0, %p3408_p7  ;;  %p3111_p9 = por %p3110_p8, %p3109_p6 }
  0x6c   : > { %p3105_p4 = pneg %p3104_p2 }
  0x6e   : > { %p3112_p10 = pnand %p3111_p9, %p3105_p4 }
  0x70   : > { %3115 = shalt.err (!%p3112_p10)
}
  0x71   : > { %2694 = dma.hbm_to_vmem [thread:$0]  (!%p3392_p5), %s3792_s4, 64, %s459_s15, [#allocation5]  }
  0x72   : > { %s3116_s22 = scalar_lea.hbm %s3794_s6, 32 }
  0x73   : > { %p3117_p1 = scmp.ne.s32.totalorder %s3794_s6, %s3116_s22  ;;  %p3123_p12 = scmp.lt.u32.totalorder %s3116_s22, %s3794_s6 }
  0x75   : > { %p3119_p3 = pnand %p3117_p1, %p3408_p7 }
  0x77   : > { %p3120_p11 = pneg %p3119_p3 }
  0x79   : > { %p3125_p13 = pnand %p3123_p12, %p3120_p11 }
  0x7b   : > { %3128 = shalt.err (!%p3125_p13)
}
  0x7c   : > { %s3129_s29 = scalar_lea.vmem %s483_s14, 32  ;;  %p3137_p6 = scmp.lt.s32.totalorder %s483_s14, %s483_s14 }
  0x7d   : > { %p3130_p0 = scmp.ne.s32.totalorder %s483_s14, %s3129_s29  ;;  %p3138_p8 = scmp.lt.s32.totalorder %s3129_s29, %s3129_s29 }
  0x7f   : > { %p3132_p2 = pnand %p3130_p0, %p3408_p7  ;;  %p3139_p9 = por %p3138_p8, %p3137_p6 }
  0x81   : > { %p3133_p4 = pneg %p3132_p2 }
  0x83   : > { %p3140_p10 = pnand %p3139_p9, %p3133_p4 }
  0x85   : > { %3143 = shalt.err (!%p3140_p10)
}
  0x86   : > { %2700 = dma.hbm_to_vmem [thread:$0]  (!%p3392_p5), %s3794_s6, 32, %s483_s14, [#allocation8]  }
  0x87   : > { %s3259_s21 = smov [#allocation12]   ;;  %s3144_s17 = scalar_lea.hbm %s3798_s10, 16 }
  0x88   : > { %s510_s12 = sshll.u32 %s3259_s21, 4  ;;  %p3145_p1 = scmp.ne.s32.totalorder %s3798_s10, %s3144_s17  ;;  %s511_s12 = int_to_ptr.vmem [resolvable:$true] %s510_s12 }
  0x89   : > { %p3151_p12 = scmp.lt.u32.totalorder %s3144_s17, %s3798_s10 }
  0x8a   : > { %p3147_p3 = pnand %p3145_p1, %p3408_p7 }
  0x8c   : > { %p3148_p11 = pneg %p3147_p3 }
  0x8e   : > { %p3153_p13 = pnand %p3151_p12, %p3148_p11 }
  0x90   : > { %3156 = shalt.err (!%p3153_p13)
}
  0x91   : > { %s3157_s14 = scalar_lea.vmem %s511_s12, 16  ;;  %s3164_s16 = scalar_lea.vmem %s511_s12, 32 }
  0x92   : > { %p3158_p0 = scmp.ne.s32.totalorder %s511_s12, %s3157_s14  ;;  %p3165_p6 = scmp.lt.s32.totalorder %s511_s12, %s511_s12 }
  0x93   : > { %p3166_p8 = scmp.lt.s32.totalorder %s3164_s16, %s3157_s14 }
  0x94   : > { %p3160_p2 = pnand %p3158_p0, %p3408_p7 }
  0x95   : > { %p3167_p9 = por %p3166_p8, %p3165_p6 }
  0x96   : > { %p3161_p4 = pneg %p3160_p2 }
  0x98   : > { %p3168_p10 = pnand %p3167_p9, %p3161_p4 }
  0x9a   : > { %3171 = shalt.err (!%p3168_p10)
}
  0x9b   : > { %2706 = dma.hbm_to_vmem [thread:$0]  (!%p3392_p5), %s3798_s10, 16, %s511_s12, [#allocation11]  }
  0x9c   : > { %s3526_s18 = sadd.s32 1, %s3248_s27   ;;  %s40_s1 = sadd.s32 1, %s3244_s26 }
  0x9d   : > { %s37_s19 = ssub.s32 %s3248_s27, %s3526_s18  ;;  %p47_p7 = scmp.ne.s32.totalorder %s3244_s26, %s3240_s25 }
  0x9e   : > { %p38_p1 = scmp.eq.s32.totalorder %s37_s19, 0  ;;  %p48_p3 = scmp.eq.s32.totalorder %s3248_s27, 0 }
  0x9f   : > { %p53_p11 = scmp.ne.s32.totalorder %s3240_s25, %s3236_s24  ;;  %p2717_p12 = scmp.lt.s32.totalorder %s3248_s27, 2 }
  0xa0   : > { %s3538_s21 = scalar_select %p38_p1, %s3244_s26, %s40_s1  }
  0xa1   : > { %p49_p13 = por %p48_p3, %p47_p7  ;;  %p3824_p0 = scmp.eq.s32.totalorder %s3377_s0, 0 }
  0xa2   : > { %s539_s13 = sand.u32 1, %s3244_s26   ;;  %s2385_s12 = sshll.u32 %s3248_s27, 6 }
  0xa3   : > { %p3542_p2 = por %p3824_p0, %p53_p11  ;;  %s2384_s17 = sshll.u32 %s539_s13, 2 }
  0xa4   : > { %s3826_s28 = sld [smem:[#allocation17_spill]]  ;;  %s543_s24 = scalar_lea.vmem [#allocation2], %s2384_s17 }
  0xa5   : > { %s550_s14 = sshll.u32 %s543_s24, 4  ;;  %p3553_p5 = pnand %p2717_p12, %p49_p13  ;;  %s3557_s14 = int_to_ptr.vmem [resolvable:$true] %s550_s14 }
  0xa6   : > { %s540_s27 = scalar_lea.sflag [#allocation3], %s539_s13 }
  0xa7   : > { %p3174_p6 = pneg %p3553_p5 }
  0xaa   : > { %s3551_s20 = scalar_lea.hbm %s3826_s28, %s2385_s12  ;;  %s3177_s19 = scalar_lea.hbm %s3826_s28, 128 }
  0xab   : > { %s3172_s29 = scalar_lea.hbm %s3551_s20, 64  ;;  %p3178_p10 = scmp.lt.u32.totalorder %s3551_s20, %s3826_s28 }
  0xac   : > { %p3173_p4 = scmp.ne.s32.totalorder %s3551_s20, %s3172_s29  ;;  %p3179_p7 = scmp.lt.u32.totalorder %s3177_s19, %s3172_s29 }
  0xad   : > { %p3181_p3 = scmp.lt.u32.totalorder %s3172_s29, %s3551_s20 }
  0xae   : > { %p3175_p8 = pnand %p3174_p6, %p3173_p4  ;;  %p3180_p1 = por %p3179_p7, %p3178_p10 }
  0xb0   : > { %p3176_p9 = pneg %p3175_p8  ;;  %p3182_p11 = por %p3181_p3, %p3180_p1 }
  0xb2   : > { %p3183_p12 = pnand %p3182_p11, %p3176_p9 }
  0xb4   : > { %3186 = shalt.err (!%p3183_p12)
}
  0xb5   : > { %s3187_s13 = scalar_lea.vmem %s3557_s14, 64  ;;  %s3260_s22 = smov [#allocation2]  }
  0xb6   : > { %p3188_p13 = scmp.ne.s32.totalorder %s3557_s14, %s3187_s13  ;;  %s3192_s23 = sshll.u32 %s3260_s22, 4  ;;  %s3193_s23 = int_to_ptr.vmem [resolvable:$false] %s3192_s23 }
  0xb7   : > { %s3194_s24 = scalar_lea.vmem %s3193_s23, 128  ;;  %p3195_p8 = scmp.lt.s32.totalorder %s3557_s14, %s3193_s23 }
  0xb8   : > { %p3190_p0 = pnand %p3188_p13, %p3174_p6  ;;  %p3196_p10 = scmp.lt.s32.totalorder %s3194_s24, %s3187_s13 }
  0xba   : > { %p3191_p4 = pneg %p3190_p0  ;;  %p3197_p7 = por %p3196_p10, %p3195_p8 }
  0xbc   : > { %p3198_p1 = pnand %p3197_p7, %p3191_p4 }
  0xbe   : > { %3201 = shalt.err (!%p3198_p1)
}
  0xbf   : > { %2710 = dma.hbm_to_vmem [thread:$0]  (!%p3553_p5), %s3551_s20, 64, %s3557_s14, %s540_s27  }
  0xc0   : > { %p3828_p9 = scmp.ne.s32.totalorder %s3821_s30, 0 }
  0xc1   : > { %s561_s29 = sand.u32 (!%p3828_p9), 1, %s3240_s25  }
  0xc2   : > { %559 = sbr.rel (%p3828_p9) target bundleno = 2307 (0x903), region = 88  ;;  %s2387_s15 = sshll.u32 (!%p3828_p9), %s561_s29, 2 }
  0xc3   : > { %s562_s1 = scalar_lea.sflag (!%p3828_p9), [#allocation3], %s561_s29  ;;  %s565_s19 = scalar_lea.vmem (!%p3828_p9), [#allocation2], %s2387_s15 }
  0xc9   : > { %3219 = dma.done.wait (%p3542_p2), %s562_s1, 64  }
  0xca   : > { %3221 = vsyncadd (%p3542_p2), %s562_s1, 4294967232  ;;  %p3829_p6 = scmp.eq.s32.totalorder %s3377_s0, 0 }
  0xcc   : > { %3223 = dma.done.wait (%p3829_p6), [#allocation5], 8256   ;;  %p3830_p3 = pmov %p3829_p6 }
  0xce   : > { %3225 = vsyncadd (%p3830_p3), [#allocation5], 4294959040  ;;  %p3831_p5 = pmov %p3830_p3 }
  0xcf   : > { %p3832_p11 = pmov %p3830_p3 }
  0xd0   : > { %3227 = dma.done.wait (%p3831_p5), [#allocation8], 8224  }
  0xd1   : > { %3229 = vsyncadd (%p3832_p11), [#allocation8], 4294959072  ;;  %p3833_p12 = pmov %p3830_p3 }
  0xd2   : > { %p3834_p13 = pmov %p3830_p3 }
  0xd3   : > { %3231 = dma.done.wait (%p3833_p12), [#allocation11], 32  }
  0xd4   : > { %3233 = vsyncadd (%p3834_p13), [#allocation11], 4294967264  ;;  %v3261_v0 = vmov 0   ;;  %s3835_s20 = sld [smem:[#allocation18_spill]]  ;;  %v2777_v5 = vld [vmem:[#allocation4 + $0x4] ss:$16 sps:$4 sm:$0xff]  }
  0xd5   : > { %717 = vmatprep.mubr.bf16.mxu0 %v3261_v0  ;;  %v644_v6 = vld [vmem:[%s565_s19] sm:$0xf]  ;;  %1140 = vmatprep.subr.bf16.mxu1 %v2777_v5  ;;  %v2782_v8 = vld [vmem:[#allocation4] ss:$16 sps:$4 sm:$0xff]   ;;  %v2783_v9 = vld [vmem:[#allocation4 + $0x24] ss:$16 sps:$4 sm:$0xff]  }
  0xd6   : > { %v2781_v7 = vld [vmem:[#allocation4 + $0xc] ss:$16 sps:$4 sm:$0xff]   ;;  %vm681_vm0 = vcmask 261120   ;;  %v2779_v10 = vld [vmem:[#allocation4 + $0x8] ss:$16 sps:$4 sm:$0xff]   ;;  %1141 = vmatpush1.bf16.msra.mxu1 %v2782_v8  ;;  %vm3263_vm9 = vmmov 0  }
  0xd7   : > { %v2787_v11 = vld [vmem:[#allocation4 + $0x2c] ss:$16 sps:$4 sm:$0xff]   ;;  %1142 = vmatprep.subr.bf16.mxu1 %v2783_v9  ;;  %v2788_v12 = vld [vmem:[#allocation4 + $0x20] ss:$16 sps:$4 sm:$0xff]   ;;  %v2789_v13 = vld [vmem:[#allocation4 + $0x44] ss:$16 sps:$4 sm:$0xff]  }
  0xd8   : > { %v2785_v14 = vld [vmem:[#allocation4 + $0x28] ss:$16 sps:$4 sm:$0xff]   ;;  %v2793_v15 = vld [vmem:[#allocation4 + $0x4c] ss:$16 sps:$4 sm:$0xff]   ;;  %v2794_v16 = vld [vmem:[#allocation4 + $0x40] ss:$16 sps:$4 sm:$0xff]  }
  0xd9   : > { %v2795_v17 = vld [vmem:[#allocation4 + $0x64] ss:$16 sps:$4 sm:$0xff]   ;;  %v2791_v18 = vld [vmem:[#allocation4 + $0x48] ss:$16 sps:$4 sm:$0xff]   ;;  %v2799_v19 = vld [vmem:[#allocation4 + $0x6c] ss:$16 sps:$4 sm:$0xff]  }
  0xda   : > { %v2771_v1 = vld [vmem:[%s3835_s20 + $0x4] ss:$8 sps:$4 sm:$0xff]   ;;  %v2773_v2 = vld [vmem:[%s3835_s20] ss:$8 sps:$4 sm:$0xff]   ;;  %v2774_v3 = vld [vmem:[%s3835_s20 + $0x14] ss:$8 sps:$4 sm:$0xff]   ;;  %1143 = vmatpush1.bf16.msra.mxu1 %v2788_v12 }
  0xdb   : > { %685 = vmatprep.subr.bf16.mxu0 %v2771_v1  ;;  %v2776_v4 = vld [vmem:[%s3835_s20 + $0x10] ss:$8 sps:$4 sm:$0xff]   ;;  %1144 = vmatprep.subr.bf16.mxu1 %v2789_v13  ;;  %v2801_v21 = vld [vmem:[#allocation4 + $0x84] ss:$16 sps:$4 sm:$0xff]   ;;  %v2805_v23 = vld [vmem:[#allocation4 + $0x8c] ss:$16 sps:$4 sm:$0xff]  }
  0xdc   : > { %686 = vmatpush1.bf16.msra.mxu0 %v2773_v2  ;;  %v2800_v20 = vld [vmem:[#allocation4 + $0x60] ss:$16 sps:$4 sm:$0xff]   ;;  %v2797_v22 = vld [vmem:[#allocation4 + $0x68] ss:$16 sps:$4 sm:$0xff]   ;;  %v2807_v25 = vld [vmem:[#allocation4 + $0xa4] ss:$16 sps:$4 sm:$0xff]  }
  0xdd   : > { %687 = vmatprep.subr.bf16.mxu0 %v2774_v3  ;;  %v2806_v24 = vld [vmem:[#allocation4 + $0x80] ss:$16 sps:$4 sm:$0xff]   ;;  %v2803_v26 = vld [vmem:[#allocation4 + $0x88] ss:$16 sps:$4 sm:$0xff]   ;;  %v2811_v27 = vld [vmem:[#allocation4 + $0xac] ss:$16 sps:$4 sm:$0xff]  }
  0xde   : > { %1145 = vmatpush1.bf16.msra.mxu1 %v2794_v16  ;;  %v2812_v28 = vld [vmem:[#allocation4 + $0xa0] ss:$16 sps:$4 sm:$0xff]   ;;  %v2813_v29 = vld [vmem:[#allocation4 + $0xc4] ss:$16 sps:$4 sm:$0xff]   ;;  %v2809_v30 = vld [vmem:[#allocation4 + $0xa8] ss:$16 sps:$4 sm:$0xff]  }
  0xdf   : > { %1146 = vmatprep.subr.bf16.mxu1 %v2795_v17  ;;  %v2817_v31 = vld [vmem:[#allocation4 + $0xcc] ss:$16 sps:$4 sm:$0xff]   ;;  %v2818_v32 = vld [vmem:[#allocation4 + $0xc0] ss:$16 sps:$4 sm:$0xff]   ;;  %v2819_v33 = vld [vmem:[#allocation4 + $0xe4] ss:$16 sps:$4 sm:$0xff]  }
  0xe0   : > { %688 = vmatpush1.bf16.msra.mxu0 %v2776_v4  ;;  %v2815_v34 = vld [vmem:[#allocation4 + $0xc8] ss:$16 sps:$4 sm:$0xff]   ;;  %v2823_v35 = vld [vmem:[#allocation4 + $0xec] ss:$16 sps:$4 sm:$0xff]   ;;  %v2824_v36 = vld [vmem:[#allocation4 + $0xe0] ss:$16 sps:$4 sm:$0xff]  }
  0xe1   : > { %1181 = vmatprep.subr.bf16.mxu0 %v2781_v7  ;;  %v2825_v37 = vld [vmem:[#allocation4 + $0x104] ss:$16 sps:$4 sm:$0xff]   ;;  %v2821_v38 = vld [vmem:[#allocation4 + $0xe8] ss:$16 sps:$4 sm:$0xff]   ;;  %v2829_v39 = vld [vmem:[#allocation4 + $0x10c] ss:$16 sps:$4 sm:$0xff]   ;;  %v651_v7 = vlaneseq }
  0xe2   : > { %1147 = vmatpush1.bf16.msra.mxu1 %v2800_v20  ;;  %v2830_v40 = vld [vmem:[#allocation4 + $0x100] ss:$16 sps:$4 sm:$0xff]   ;;  %v2831_v41 = vld [vmem:[#allocation4 + $0x124] ss:$16 sps:$4 sm:$0xff]   ;;  %v2827_v42 = vld [vmem:[#allocation4 + $0x108] ss:$16 sps:$4 sm:$0xff]  }
  0xe3   : > { %2399 = vmatmul.mubr.msk.bf16.vlgmr.msra.gmra.mrb[0].mxu0 %vm681_vm0, %v644_v6  ;;  %1148 = vmatprep.subr.bf16.mxu1 %v2801_v21  ;;  %v2836_v43 = vld [vmem:[#allocation4 + $0x120] ss:$16 sps:$4 sm:$0xff]   ;;  %v2835_v44 = vld [vmem:[#allocation4 + $0x12c] ss:$16 sps:$4 sm:$0xff]   ;;  %v2837_v45 = vld [vmem:[#allocation4 + $0x144] ss:$16 sps:$4 sm:$0xff]  }
  0xe4   : > { %1182 = vmatpush1.bf16.msra.mxu0 %v2779_v10  ;;  %v2833_v46 = vld [vmem:[#allocation4 + $0x128] ss:$16 sps:$4 sm:$0xff]   ;;  %v2842_v47 = vld [vmem:[#allocation4 + $0x140] ss:$16 sps:$4 sm:$0xff]   ;;  %v2841_v48 = vld [vmem:[#allocation4 + $0x14c] ss:$16 sps:$4 sm:$0xff]  }
  0xe5   : > { %1183 = vmatprep.subr.bf16.mxu0 %v2787_v11  ;;  %v2843_v49 = vld [vmem:[#allocation4 + $0x164] ss:$16 sps:$4 sm:$0xff]   ;;  %v2839_v50 = vld [vmem:[#allocation4 + $0x148] ss:$16 sps:$4 sm:$0xff]   ;;  %v2848_v51 = vld [vmem:[#allocation4 + $0x160] ss:$16 sps:$4 sm:$0xff]  }
  0xe6   : > { %1149 = vmatpush1.bf16.msra.mxu1 %v2806_v24  ;;  %v2847_v52 = vld [vmem:[#allocation4 + $0x16c] ss:$16 sps:$4 sm:$0xff]   ;;  %v2849_v53 = vld [vmem:[#allocation4 + $0x184] ss:$16 sps:$4 sm:$0xff]   ;;  %v2845_v54 = vld [vmem:[#allocation4 + $0x168] ss:$16 sps:$4 sm:$0xff]  }
  0xe7   : > { %1150 = vmatprep.subr.bf16.mxu1 %v2807_v25  ;;  %v2854_v55 = vld [vmem:[#allocation4 + $0x180] ss:$16 sps:$4 sm:$0xff]   ;;  %v2853_v56 = vld [vmem:[#allocation4 + $0x18c] ss:$16 sps:$4 sm:$0xff]   ;;  %v2855_v57 = vld [vmem:[#allocation4 + $0x1a4] ss:$16 sps:$4 sm:$0xff]  }
  0xe8   : > { %1184 = vmatpush1.bf16.msra.mxu0 %v2785_v14  ;;  %v2851_v58 = vld [vmem:[#allocation4 + $0x188] ss:$16 sps:$4 sm:$0xff]   ;;  %v2860_v59 = vld [vmem:[#allocation4 + $0x1a0] ss:$16 sps:$4 sm:$0xff]   ;;  %v2859_v60 = vld [vmem:[#allocation4 + $0x1ac] ss:$16 sps:$4 sm:$0xff]  }
  0xe9   : > { %1185 = vmatprep.subr.bf16.mxu0 %v2793_v15  ;;  %v2857_v61 = vld [vmem:[#allocation4 + $0x1a8] ss:$16 sps:$4 sm:$0xff]   ;;  %v2861_v62 = vld [vmem:[#allocation4 + $0x1c4] ss:$16 sps:$4 sm:$0xff]   ;;  %v2865_v63 = vld [vmem:[#allocation4 + $0x1cc] ss:$16 sps:$4 sm:$0xff]  }
  0xea   : > { %1151 = vmatpush1.bf16.msra.mxu1 %v2812_v28  ;;  %v2863_v0 = vld [vmem:[#allocation4 + $0x1c8] ss:$16 sps:$4 sm:$0xff]   ;;  %v2866_v1 = vld [vmem:[#allocation4 + $0x1c0] ss:$16 sps:$4 sm:$0xff]   ;;  %v2867_v2 = vld [vmem:[#allocation4 + $0x1e4] ss:$16 sps:$4 sm:$0xff]  }
  0xeb   : > { %1152 = vmatprep.subr.bf16.mxu1 %v2813_v29  ;;  %v2869_v3 = vld [vmem:[#allocation4 + $0x1e8] ss:$16 sps:$4 sm:$0xff]   ;;  %v2871_v4 = vld [vmem:[#allocation4 + $0x1ec] ss:$16 sps:$4 sm:$0xff]   ;;  %v2872_v5 = vld [vmem:[#allocation4 + $0x1e0] ss:$16 sps:$4 sm:$0xff]  }
  0xec   : > { %1186 = vmatpush1.bf16.msra.mxu0 %v2791_v18  ;;  %v2875_v6 = vld [vmem:[#allocation7 + $0x4] ss:$8 sps:$4 sm:$0xff]   ;;  %v3616_v8 = vshrl.u32 %v651_v7, 7  ;;  %v649_v10 = vld [vmem:[%s3790_s2] sm:$0x3]  ;;  %s3836_s30 = sld [smem:[#allocation19_spill]] }
  0xed   : > { %1187 = vmatprep.subr.bf16.mxu0 %v2799_v19  ;;  %v2873_v25 = vld [vmem:[#allocation7] ss:$8 sps:$4 sm:$0xff]   ;;  %v2876_v28 = vld [vmem:[#allocation7 + $0x10] ss:$8 sps:$4 sm:$0xff]   ;;  %v2881_v29 = vld [vmem:[#allocation7 + $0x24] ss:$8 sps:$4 sm:$0xff]  }
  0xee   : > { %1153 = vmatpush1.bf16.msra.mxu1 %v2818_v32  ;;  %v3619_v9 = vsub.s32 0, %v3616_v8  ;;  %v3625_v11 = vsub.s32 1, %v3616_v8  ;;  %v2882_v32 = vld [vmem:[#allocation7 + $0x30] ss:$8 sps:$4 sm:$0xff]   ;;  %v814_v7 = vsub.s32 3, %v3616_v8  ;;  %vm2057_vm12 = vcmask 523264  }
  0xef   : > { %1154 = vmatprep.subr.bf16.mxu1 %v2819_v33  ;;  %v2887_v33 = vld [vmem:[#allocation7 + $0x44] ss:$8 sps:$4 sm:$0xff]   ;;  %s3837_s23 = sld [smem:[#allocation21_spill]]  ;;  %s3838_s19 = sld [smem:[#allocation20_spill]]  ;;  %vm2190_vm15 = vcmask 130048  }
  0xf0   : > { %1188 = vmatpush1.bf16.msra.mxu0 %v2797_v22  ;;  %v654_v12 = vrot.slane %v649_v10, %v3619_v9  ;;  %v658_v13 = vrot.slane %v649_v10, %v3625_v11  ;;  %s3839_s16 = sld [smem:[#allocation23_spill]]  ;;  %s3840_s17 = sld [smem:[#allocation22_spill]] }
  0xf1   : > { %1189 = vmatprep.subr.bf16.mxu0 %v2805_v23  ;;  %s3841_s24 = sld [smem:[#allocation24_spill]]  ;;  %s3264_s29 = smov 1  }
  0xf2   : > { %1155 = vmatpush1.bf16.msra.mxu1 %v2824_v36  ;;  %v2888_v36 = vld [vmem:[#allocation7 + $0x50] ss:$8 sps:$4 sm:$0xff]   ;;  %s3265_s15 = smov 127   ;;  %p639_p2 = scmp.lt.s32.totalorder %s3377_s0, 1 }
  0xf3   : > { %1156 = vmatprep.subr.bf16.mxu1 %v2825_v37  ;;  %v2893_v37 = vld [vmem:[#allocation7 + $0x64] ss:$8 sps:$4 sm:$0xff]   ;;  %s3842_s14 = sld [smem:[#allocation25_spill]] }
  0xf4   : > { %1190 = vmatpush1.bf16.msra.mxu0 %v2803_v26  ;;  %s3848_s0 = smov (!%p639_p2, %s3377_s0), 1 }
  0xf5   : > { %1191 = vmatprep.subr.bf16.mxu0 %v2811_v27  ;;  %v2878_v27 = vld [vmem:[#allocation7 + $0x14] ss:$8 sps:$4 sm:$0xff]   ;;  %s2394_s1 = sshll.u32 %s3848_s0, 3 }
  0xf6   : > { %1157 = vmatpush1.bf16.msra.mxu1 %v2830_v40  ;;  %v2894_v40 = vld [vmem:[#allocation7 + $0x70] ss:$8 sps:$4 sm:$0xff]  }
  0xf7   : > { %1158 = vmatprep.subr.bf16.mxu1 %v2831_v41  ;;  %v2899_v41 = vld [vmem:[#allocation7 + $0x84] ss:$8 sps:$4 sm:$0xff]  }
  0xf8   : > { %1192 = vmatpush1.bf16.msra.mxu0 %v2809_v30  ;;  %v2879_v30 = vld [vmem:[#allocation7 + $0x20] ss:$8 sps:$4 sm:$0xff]  }
  0xf9   : > { %1193 = vmatprep.subr.bf16.mxu0 %v2817_v31  ;;  %v2884_v31 = vld [vmem:[#allocation7 + $0x34] ss:$8 sps:$4 sm:$0xff]  }
  0xfa   : > { %1159 = vmatpush1.bf16.msra.mxu1 %v2836_v43  ;;  %v2902_v43 = vld [vmem:[#allocation7 + $0x94] ss:$8 sps:$4 sm:$0xff]  }
  0xfb   : > { %1160 = vmatprep.subr.bf16.mxu1 %v2837_v45  ;;  %v2905_v45 = vld [vmem:[#allocation7 + $0xa4] ss:$8 sps:$4 sm:$0xff]  }
  0xfc   : > { %1194 = vmatpush1.bf16.msra.mxu0 %v2815_v34  ;;  %v2885_v34 = vld [vmem:[#allocation7 + $0x40] ss:$8 sps:$4 sm:$0xff]  }
  0xfd   : > { %1195 = vmatprep.subr.bf16.mxu0 %v2823_v35  ;;  %v2890_v35 = vld [vmem:[#allocation7 + $0x54] ss:$8 sps:$4 sm:$0xff]  }
  0xfe   : > { %1161 = vmatpush1.bf16.msra.mxu1 %v2842_v47  ;;  %v2908_v47 = vld [vmem:[#allocation7 + $0xb4] ss:$8 sps:$4 sm:$0xff]  }
  0xff   : > { %1162 = vmatprep.subr.bf16.mxu1 %v2843_v49  ;;  %v2911_v49 = vld [vmem:[#allocation7 + $0xc4] ss:$8 sps:$4 sm:$0xff]  }
 0x100   : > { %1196 = vmatpush1.bf16.msra.mxu0 %v2821_v38  ;;  %v2891_v38 = vld [vmem:[#allocation7 + $0x60] ss:$8 sps:$4 sm:$0xff]  }
 0x101   : > { %1197 = vmatprep.subr.bf16.mxu0 %v2829_v39  ;;  %v2896_v39 = vld [vmem:[#allocation7 + $0x74] ss:$8 sps:$4 sm:$0xff]  }
 0x102   : > { %1163 = vmatpush1.bf16.msra.mxu1 %v2848_v51  ;;  %v2914_v51 = vld [vmem:[#allocation7 + $0xd4] ss:$8 sps:$4 sm:$0xff]  }
 0x103   : > { %1164 = vmatprep.subr.bf16.mxu1 %v2849_v53  ;;  %v2917_v53 = vld [vmem:[#allocation7 + $0xe4] ss:$8 sps:$4 sm:$0xff]  }
 0x104   : > { %1198 = vmatpush1.bf16.msra.mxu0 %v2827_v42  ;;  %v2897_v42 = vld [vmem:[#allocation7 + $0x80] ss:$8 sps:$4 sm:$0xff]  }
 0x105   : > { %1199 = vmatprep.subr.bf16.mxu0 %v2835_v44  ;;  %v2900_v44 = vld [vmem:[#allocation7 + $0x90] ss:$8 sps:$4 sm:$0xff]  }
 0x106   : > { %1165 = vmatpush1.bf16.msra.mxu1 %v2854_v55  ;;  %v2920_v55 = vld [vmem:[#allocation7 + $0xf4] ss:$8 sps:$4 sm:$0xff]  }
 0x107   : > { %1166 = vmatprep.subr.bf16.mxu1 %v2855_v57  ;;  %v2923_v57 = vld [vmem:[#allocation7 + $0x104] ss:$8 sps:$4 sm:$0xff]  }
 0x108   : > { %1200 = vmatpush1.bf16.msra.mxu0 %v2833_v46  ;;  %v2903_v46 = vld [vmem:[#allocation7 + $0xa0] ss:$8 sps:$4 sm:$0xff]  }
 0x109   : > { %1201 = vmatprep.subr.bf16.mxu0 %v2841_v48  ;;  %v2906_v48 = vld [vmem:[#allocation7 + $0xb0] ss:$8 sps:$4 sm:$0xff]  }
 0x10a   : > { %1167 = vmatpush1.bf16.msra.mxu1 %v2860_v59  ;;  %v2970_v59 = vld [vmem:[%s3795_s7] sm:$0xff]  }
 0x10b   : > { %1168 = vmatprep.subr.bf16.mxu1 %v2861_v62  ;;  %v2973_v62 = vld [vmem:[%s3795_s7 + $0x50] sm:$0xff]  }
 0x10c   : > { %1202 = vmatpush1.bf16.msra.mxu0 %v2839_v50  ;;  %v2909_v50 = vld [vmem:[#allocation7 + $0xc0] ss:$8 sps:$4 sm:$0xff]  }
 0x10d   : > { %1203 = vmatprep.subr.bf16.mxu0 %v2847_v52  ;;  %v2912_v52 = vld [vmem:[#allocation7 + $0xd0] ss:$8 sps:$4 sm:$0xff]  }
 0x10e   : > { %1169 = vmatpush1.bf16.msra.mxu1 %v2866_v1  ;;  %v2976_v1 = vld [vmem:[%s3795_s7 + $0x18] sm:$0xff]  }
 0x10f   : > { %1170 = vmatprep.subr.bf16.mxu1 %v2867_v2  ;;  %v2977_v2 = vld [vmem:[%s3795_s7 + $0x60] sm:$0xff]  }
 0x110   : > { %1204 = vmatpush1.bf16.msra.mxu0 %v2845_v54  ;;  %v2915_v54 = vld [vmem:[#allocation7 + $0xe0] ss:$8 sps:$4 sm:$0xff]  }
 0x111   : > { %1205 = vmatprep.subr.bf16.mxu0 %v2853_v56  ;;  %v2918_v56 = vld [vmem:[#allocation7 + $0xf0] ss:$8 sps:$4 sm:$0xff]  }
 0x112   : > { %1171 = vmatpush1.bf16.msra.mxu1 %v2872_v5  ;;  %v2980_v5 = vld [vmem:[%s3795_s7 + $0x28] sm:$0xff]  }
 0x113   : > { %1634 = vmatprep.subr.bf16.mxu1 %v2875_v6  ;;  %v3665_v6 = vld [vmem:[#allocation6] sm:$0xf] }
 0x114   : > { %1206 = vmatpush1.bf16.msra.mxu0 %v2851_v58  ;;  %v2969_v58 = vld [vmem:[%s3795_s7 + $0x40] sm:$0xff]   ;;  %v803_v10 = vrot.slane %v3665_v6, %v3619_v9 }
 0x115   : > { %1207 = vmatprep.subr.bf16.mxu0 %v2859_v60  ;;  %v2971_v60 = vld [vmem:[%s3795_s7 + $0x48] sm:$0xff]  }
 0x118   : > { %1208 = vmatpush1.bf16.msra.mxu0 %v2857_v61  ;;  %v2972_v61 = vld [vmem:[%s3795_s7 + $0x8] sm:$0xff]  }
 0x119   : > { %1209 = vmatprep.subr.bf16.mxu0 %v2865_v63  ;;  %v2974_v63 = vld [vmem:[%s3795_s7 + $0x10] sm:$0xff]  }
 0x11c   : > { %1210 = vmatpush1.bf16.msra.mxu0 %v2863_v0  ;;  %v2975_v0 = vld [vmem:[%s3795_s7 + $0x58] sm:$0xff]  }
 0x11d   : > { %1211 = vmatprep.subr.bf16.mxu0 %v2871_v4  ;;  %v2979_v4 = vld [vmem:[%s3795_s7 + $0x68] sm:$0xff]  }
 0x120   : > { %1212 = vmatpush1.bf16.msra.mxu0 %v2869_v3  ;;  %v2978_v3 = vld [vmem:[%s3795_s7 + $0x20] sm:$0xff]  }
 0x121   : > { %2569 = vmatprep.subr.bf16.mxu0 %v2969_v58  ;;  %v810_v58 = vsub.s32 2, %v3616_v8  ;;  %v2966_v8 = vld [vmem:[#allocation7 + $0x1f0] ss:$8 sps:$4 sm:$0xff]  }
 0x1b6   : > { %v719_v14 = vpop.f32.mrb[0].mxu0 }
 0x1b7   : > { %v720_v15 = vadd.f32 %v719_v14, %v654_v12  ;;  %v721_v16 = vpop.f32.mrb[1].mxu0  ;;  %v807_v12 = vrot.slane %v3665_v6, %v3625_v11 }
 0x1b8   : > { %v722_v17 = vadd.f32 %v721_v16, %v658_v13  ;;  %v723_v18 = vpop.f32.mrb[2].mxu0  ;;  %v815_v13 = vrot.slane %v3665_v6, %v814_v7  ;;  %v2982_v7 = vld [vmem:[%s3795_s7 + $0x30] sm:$0xff]  }
 0x1b9   : > { %vm726_vm1 = vcmp.gt.f32.partialorder %v720_v15, 0.0  ;;  %v728_v19 = vmul.f32 0.01, %v720_v15  ;;  %v724_v20 = vpop.f32.mrb[3].mxu0 }
 0x1ba   : > { %v729_v21 = vmul.f32 0.01, %v722_v17  ;;  %vm727_vm2 = vcmp.gt.f32.partialorder %v722_v17, 0.0 }
 0x1bb   : > { %v730_v22 = vsel %vm726_vm1, %v720_v15, %v728_v19  ;;  %vm2251_vm1 = vcmask 15360  }
 0x1bc   : > { %v731_v23 = vsel %vm727_vm2, %v722_v17, %v729_v21  ;;  %v732_v26 = vpack.c.bf16 %v730_v22, %v730_v22 }
 0x1bd   : > { %v733_v24 = vpack.c.bf16 %v731_v23, %v731_v23 }
 0x1bf   : > { %1172 = vmatprep.mubr.bf16.mxu1 %v733_v24  ;;  %1213 = vmatprep.mubr.bf16.mxu0 %v733_v24 }
 0x1c0   : > { %1173 = vmatmul.mubr.bf16.vlgmr.msra.gmra.mrb[0].mxu1 %v732_v26  ;;  %1214 = vmatmul.mubr.bf16.vlgmr.msra.gmra.mrb[4].mxu0 %v732_v26 }
 0x1c1   : > { %1635 = vmatpush1.bf16.msra.mxu1 %v2873_v25  ;;  %2570 = vmatpush3.bf16.msra.mxu0 %v2970_v59  ;;  %v2957_v59 = vld [vmem:[#allocation7 + $0x1c0] ss:$8 sps:$4 sm:$0xff]  }
 0x1c2   : > { %1636 = vmatprep.subr.bf16.mxu1 %v2878_v27  ;;  %2571 = vmatprep.subr.bf16.mxu0 %v2971_v60  ;;  %v2962_v60 = vld [vmem:[#allocation7 + $0x1d4] ss:$8 sps:$4 sm:$0xff]  }
 0x1c5   : > { %1637 = vmatpush1.bf16.msra.mxu1 %v2876_v28  ;;  %2572 = vmatpush3.bf16.msra.mxu0 %v2972_v61  ;;  %v811_v61 = vrot.slane %v3665_v6, %v810_v58  ;;  %v2981_v6 = vld [vmem:[%s3795_s7 + $0x70] sm:$0xff]   ;;  %v2997_v58 = vld [vmem:[%s3837_s23] sm:$0xff]  }
 0x1c6   : > { %1638 = vmatprep.subr.bf16.mxu1 %v2881_v29  ;;  %2573 = vmatprep.subr.bf16.mxu0 %v2973_v62  ;;  %v2960_v62 = vld [vmem:[#allocation7 + $0x1d0] ss:$8 sps:$4 sm:$0xff]  }
 0x1c9   : > { %1639 = vmatpush1.bf16.msra.mxu1 %v2879_v30  ;;  %2574 = vmatpush3.bf16.msra.mxu0 %v2974_v63  ;;  %v2965_v63 = vld [vmem:[#allocation7 + $0x1e4] ss:$8 sps:$4 sm:$0xff]  }
 0x1ca   : > { %1640 = vmatprep.subr.bf16.mxu1 %v2884_v31  ;;  %2575 = vmatprep.subr.bf16.mxu0 %v2975_v0 }
 0x1cd   : > { %1641 = vmatpush1.bf16.msra.mxu1 %v2882_v32  ;;  %2576 = vmatpush3.bf16.msra.mxu0 %v2976_v1  ;;  %v2921_v32 = vld [vmem:[#allocation7 + $0x100] ss:$8 sps:$4 sm:$0xff]  }
 0x1ce   : > { %1642 = vmatprep.subr.bf16.mxu1 %v2887_v33  ;;  %2577 = vmatprep.subr.bf16.mxu0 %v2977_v2  ;;  %v2963_v1 = vld [vmem:[#allocation7 + $0x1e0] ss:$8 sps:$4 sm:$0xff]   ;;  %v2968_v2 = vld [vmem:[#allocation7 + $0x1f4] ss:$8 sps:$4 sm:$0xff]  }
 0x1d1   : > { %1643 = vmatpush1.bf16.msra.mxu1 %v2885_v34  ;;  %2578 = vmatpush3.bf16.msra.mxu0 %v2978_v3  ;;  %v2926_v34 = vld [vmem:[#allocation7 + $0x114] ss:$8 sps:$4 sm:$0xff]  }
 0x1d2   : > { %1644 = vmatprep.subr.bf16.mxu1 %v2890_v35  ;;  %2579 = vmatprep.subr.bf16.mxu0 %v2979_v4 }
 0x1d5   : > { %1645 = vmatpush1.bf16.msra.mxu1 %v2888_v36  ;;  %2580 = vmatpush3.bf16.msra.mxu0 %v2980_v5  ;;  %v2924_v36 = vld [vmem:[#allocation7 + $0x110] ss:$8 sps:$4 sm:$0xff]  }
 0x1d6   : > { %1646 = vmatprep.subr.bf16.mxu1 %v2893_v37  ;;  %v2929_v37 = vld [vmem:[#allocation7 + $0x124] ss:$8 sps:$4 sm:$0xff]   ;;  %2581 = vmatprep.subr.bf16.mxu0 %v2981_v6 }
 0x1d9   : > { %1647 = vmatpush1.bf16.msra.mxu1 %v2891_v38  ;;  %v2927_v38 = vld [vmem:[#allocation7 + $0x120] ss:$8 sps:$4 sm:$0xff]   ;;  %2582 = vmatpush3.bf16.msra.mxu0 %v2982_v7 }
 0x1da   : > { %1648 = vmatprep.subr.bf16.mxu1 %v2896_v39  ;;  %v2932_v39 = vld [vmem:[#allocation7 + $0x134] ss:$8 sps:$4 sm:$0xff]  }
 0x1dd   : > { %1649 = vmatpush1.bf16.msra.mxu1 %v2894_v40  ;;  %v2930_v40 = vld [vmem:[#allocation7 + $0x130] ss:$8 sps:$4 sm:$0xff]  }
 0x1de   : > { %1650 = vmatprep.subr.bf16.mxu1 %v2899_v41  ;;  %v2935_v41 = vld [vmem:[#allocation7 + $0x144] ss:$8 sps:$4 sm:$0xff]  }
 0x1e1   : > { %1651 = vmatpush1.bf16.msra.mxu1 %v2897_v42  ;;  %v2933_v42 = vld [vmem:[#allocation7 + $0x140] ss:$8 sps:$4 sm:$0xff]  }
 0x1e2   : > { %1652 = vmatprep.subr.bf16.mxu1 %v2902_v43  ;;  %v2938_v43 = vld [vmem:[#allocation7 + $0x154] ss:$8 sps:$4 sm:$0xff]  }
 0x1e5   : > { %1653 = vmatpush1.bf16.msra.mxu1 %v2900_v44  ;;  %v2936_v44 = vld [vmem:[#allocation7 + $0x150] ss:$8 sps:$4 sm:$0xff]  }
 0x1e6   : > { %1654 = vmatprep.subr.bf16.mxu1 %v2905_v45  ;;  %v2941_v45 = vld [vmem:[#allocation7 + $0x164] ss:$8 sps:$4 sm:$0xff]  }
 0x1e9   : > { %1655 = vmatpush1.bf16.msra.mxu1 %v2903_v46  ;;  %v2939_v46 = vld [vmem:[#allocation7 + $0x160] ss:$8 sps:$4 sm:$0xff]  }
 0x1ea   : > { %1656 = vmatprep.subr.bf16.mxu1 %v2908_v47  ;;  %v2944_v47 = vld [vmem:[#allocation7 + $0x174] ss:$8 sps:$4 sm:$0xff]  }
 0x1ed   : > { %1657 = vmatpush1.bf16.msra.mxu1 %v2906_v48  ;;  %v2942_v48 = vld [vmem:[#allocation7 + $0x170] ss:$8 sps:$4 sm:$0xff]  }
 0x1ee   : > { %1658 = vmatprep.subr.bf16.mxu1 %v2911_v49  ;;  %v2947_v49 = vld [vmem:[#allocation7 + $0x184] ss:$8 sps:$4 sm:$0xff]  }
 0x1f1   : > { %1659 = vmatpush1.bf16.msra.mxu1 %v2909_v50  ;;  %v2945_v50 = vld [vmem:[#allocation7 + $0x180] ss:$8 sps:$4 sm:$0xff]  }
 0x1f2   : > { %1660 = vmatprep.subr.bf16.mxu1 %v2914_v51  ;;  %v2950_v51 = vld [vmem:[#allocation7 + $0x194] ss:$8 sps:$4 sm:$0xff]  }
 0x1f5   : > { %1661 = vmatpush1.bf16.msra.mxu1 %v2912_v52  ;;  %v2948_v52 = vld [vmem:[#allocation7 + $0x190] ss:$8 sps:$4 sm:$0xff]  }
 0x1f6   : > { %1662 = vmatprep.subr.bf16.mxu1 %v2917_v53  ;;  %v2953_v53 = vld [vmem:[#allocation7 + $0x1a4] ss:$8 sps:$4 sm:$0xff]  }
 0x1f9   : > { %1663 = vmatpush1.bf16.msra.mxu1 %v2915_v54  ;;  %v2951_v54 = vld [vmem:[#allocation7 + $0x1a0] ss:$8 sps:$4 sm:$0xff]  }
 0x1fa   : > { %1664 = vmatprep.subr.bf16.mxu1 %v2920_v55  ;;  %v2956_v55 = vld [vmem:[#allocation7 + $0x1b4] ss:$8 sps:$4 sm:$0xff]  }
 0x1fd   : > { %1665 = vmatpush1.bf16.msra.mxu1 %v2918_v56  ;;  %v2954_v56 = vld [vmem:[#allocation7 + $0x1b0] ss:$8 sps:$4 sm:$0xff]  }
 0x1fe   : > { %1675 = vmatprep.subr.bf16.mxu1 %v2923_v57  ;;  %v2959_v57 = vld [vmem:[#allocation7 + $0x1c4] ss:$8 sps:$4 sm:$0xff]  }
 0x293   : > { %v1174_v14 = vpop.f32.mrb[0].mxu1  ;;  %v3673_v15 = vpop.f32.mrb[4].mxu0 }
 0x294   : > { %v1175_v16 = vadd.f32 %v1174_v14, %v803_v10  ;;  %v1176_v17 = vpop.f32.mrb[1].mxu1  ;;  %v1217_v18 = vpop.f32.mrb[5].mxu0  ;;  %v1216_v0 = vadd.f32 %v3673_v15, %v811_v61  ;;  %v2983_v10 = vld [vmem:[%s3795_s7 + $0x78] sm:$0xff]   ;;  %v1302_v14 = vld [vmem:[#allocation9] sm:$0x3] }
 0x295   : > { %v1177_v19 = vadd.f32 %v1176_v17, %v807_v12  ;;  %v1218_v20 = vadd.f32 %v1217_v18, %v815_v13  ;;  %v1178_v21 = vpop.f32.mrb[2].mxu1  ;;  %v1219_v22 = vpop.f32.mrb[6].mxu0  ;;  %v2984_v12 = vld [vmem:[%s3795_s7 + $0x38] sm:$0xff]   ;;  %2583 = vmatprep.subr.bf16.mxu0 %v2983_v10  ;;  %v3262_v13 = vmov 0.0   ;;  %v1307_v15 = vrot.slane %v1302_v14, %v3619_v9 }
 0x296   : > { %vm1222_vm3 = vcmp.gt.f32.partialorder %v1175_v16, 0.0  ;;  %v1226_v23 = vmul.f32 0.01, %v1175_v16  ;;  %v1179_v27 = vpop.f32.mrb[3].mxu1  ;;  %v1220_v28 = vpop.f32.mrb[7].mxu0  ;;  %vm1224_vm6 = vcmp.gt.f32.partialorder %v1216_v0, 0.0  ;;  %2584 = vmatpush3.bf16.msra.mxu0 %v2984_v12 }
 0x297   : > { %vm1223_vm4 = vcmp.gt.f32.partialorder %v1177_v19, 0.0  ;;  %v1227_v24 = vmul.f32 0.01, %v1177_v19  ;;  %vm1225_vm5 = vcmp.gt.f32.partialorder %v1218_v20, 0.0  ;;  %v1229_v25 = vmul.f32 0.01, %v1218_v20  ;;  %2610 = vmatprep.subr.bf16.mxu0 %v3262_v13 }
 0x298   : > { %v1230_v26 = vsel %vm1222_vm3, %v1175_v16, %v1226_v23  ;;  %v1228_v3 = vmul.f32 0.01, %v1216_v0  ;;  %v1311_v16 = vrot.slane %v1302_v14, %v3625_v11  ;;  %v2985_v28 = vld [vmem:[%s3797_s9] sm:$0xff]   ;;  %v2986_v11 = vld [vmem:[%s3797_s9 + $0x8] sm:$0xff]  }
 0x299   : > { %v1231_v29 = vsel %vm1223_vm4, %v1177_v19, %v1227_v24  ;;  %v1233_v30 = vsel %vm1225_vm5, %v1218_v20, %v1229_v25  ;;  %v1234_v33 = vpack.c.bf16 %v1230_v26, %v1230_v26 }
 0x29a   : > { %v1235_v31 = vpack.c.bf16 %v1231_v29, %v1231_v29  ;;  %v1237_v35 = vpack.c.bf16 %v1233_v30, %v1233_v30  ;;  %v1232_v4 = vsel %vm1224_vm6, %v1216_v0, %v1228_v3  ;;  %v2987_v29 = vld [vmem:[%s3797_s9 + $0x10] sm:$0xff]   ;;  %v2988_v30 = vld [vmem:[%s3797_s9 + $0x18] sm:$0xff]  }
 0x29b   : > { %v1236_v5 = vpack.c.bf16 %v1232_v4, %v1232_v4  ;;  %v2999_v4 = vld [vmem:[%s3839_s16] sm:$0xff]   ;;  %s642_s16 = scalar_lea.vmem %s3842_s14, %s2394_s1 }
 0x29c   : > { %1666 = vmatprep.mubr.bf16.mxu1 %v1235_v31  ;;  %v2989_v31 = vld [vmem:[%s3797_s9 + $0x20] sm:$0xff]  }
 0x29d   : > { %1667 = vmatmul.mubr.bf16.vlgmr.msra.gmra.mrb[4].mxu1 %v1234_v33  ;;  %v2991_v33 = vld [vmem:[%s3797_s9 + $0x30] sm:$0xff]  }
 0x29e   : > { %1676 = vmatpush1.bf16.msra.mxu1 %v2921_v32  ;;  %1707 = vmatprep.mubr.bf16.mxu1 %v1237_v35  ;;  %v2990_v32 = vld [vmem:[%s3797_s9 + $0x28] sm:$0xff]  }
 0x29f   : > { %1677 = vmatprep.subr.bf16.mxu1 %v2926_v34  ;;  %v2992_v34 = vld [vmem:[%s3797_s9 + $0x38] sm:$0xff]  }
 0x2a2   : > { %1678 = vmatpush1.bf16.msra.mxu1 %v2924_v36  ;;  %v2528_v36 = vld [vmem:[#allocation10] ss:$0 sm:$0xff] }
 0x2a3   : > { %1679 = vmatprep.subr.bf16.mxu1 %v2929_v37 }
 0x2a6   : > { %1680 = vmatpush1.bf16.msra.mxu1 %v2927_v38 }
 0x2a7   : > { %1681 = vmatprep.subr.bf16.mxu1 %v2932_v39 }
 0x2aa   : > { %1682 = vmatpush1.bf16.msra.mxu1 %v2930_v40 }
 0x2ab   : > { %1683 = vmatprep.subr.bf16.mxu1 %v2935_v41 }
 0x2ae   : > { %1684 = vmatpush1.bf16.msra.mxu1 %v2933_v42 }
 0x2af   : > { %1685 = vmatprep.subr.bf16.mxu1 %v2938_v43 }
 0x2b2   : > { %1686 = vmatpush1.bf16.msra.mxu1 %v2936_v44  ;;  %v2993_v44 = vld [vmem:[%s3836_s30] sm:$0xff]  }
 0x2b3   : > { %1687 = vmatprep.subr.bf16.mxu1 %v2941_v45 }
 0x2b6   : > { %1688 = vmatpush1.bf16.msra.mxu1 %v2939_v46  ;;  %v2994_v46 = vld [vmem:[%s3836_s30 + $0x8] sm:$0xff]  }
 0x2b7   : > { %1689 = vmatprep.subr.bf16.mxu1 %v2944_v47  ;;  %v2995_v47 = vld [vmem:[%s3836_s30 + $0x10] sm:$0xff]  }
 0x2ba   : > { %1690 = vmatpush1.bf16.msra.mxu1 %v2942_v48  ;;  %v2996_v48 = vld [vmem:[%s3836_s30 + $0x18] sm:$0xff]  }
 0x2bb   : > { %1691 = vmatprep.subr.bf16.mxu1 %v2947_v49  ;;  %v2545_v49 = vld [vmem:[#allocation12] ss:$0 sm:$0xff] }
 0x2be   : > { %1692 = vmatpush1.bf16.msra.mxu1 %v2945_v50 }
 0x2bf   : > { %1693 = vmatprep.subr.bf16.mxu1 %v2950_v51 }
 0x2c2   : > { %1694 = vmatpush1.bf16.msra.mxu1 %v2948_v52 }
 0x2c3   : > { %1695 = vmatprep.subr.bf16.mxu1 %v2953_v53 }
 0x2c6   : > { %1696 = vmatpush1.bf16.msra.mxu1 %v2951_v54 }
 0x2c7   : > { %1697 = vmatprep.subr.bf16.mxu1 %v2956_v55 }
 0x2ca   : > { %1698 = vmatpush1.bf16.msra.mxu1 %v2954_v56 }
 0x2cb   : > { %1699 = vmatprep.subr.bf16.mxu1 %v2959_v57 }
 0x2ce   : > { %1700 = vmatpush1.bf16.msra.mxu1 %v2957_v59  ;;  %v2998_v59 = vld [vmem:[%s3837_s23 + $0x8] sm:$0xff]  }
 0x2cf   : > { %1701 = vmatprep.subr.bf16.mxu1 %v2962_v60  ;;  %v2554_v60 = vld [vmem:[%s3838_s19] ss:$0 sm:$0xff] }
 0x2d2   : > { %1702 = vmatpush1.bf16.msra.mxu1 %v2960_v62 }
 0x2d3   : > { %1703 = vmatprep.subr.bf16.mxu1 %v2965_v63 }
 0x2d6   : > { %1704 = vmatpush1.bf16.msra.mxu1 %v2963_v1 }
 0x2d7   : > { %1705 = vmatprep.subr.bf16.mxu1 %v2968_v2 }
 0x2da   : > { %1706 = vmatpush1.bf16.msra.mxu1 %v2966_v8 }
 0x2dd   : > { %1708 = vmatmul.mubr.bf16.vlgmr.msra.gmra.mrb[4].mxu1 %v1236_v5  ;;  %v2560_v5 = vld [vmem:[%s3840_s17] ss:$0 sm:$0xff] }
 0x3b0   : > { %v1709_v17 = vpop.f32.mrb[4].mxu1 }
 0x3b1   : > { %v2656_v18 = vadd.f32 %v1709_v17, %v1307_v15  ;;  %v1711_v19 = vpop.f32.mrb[5].mxu1 }
 0x3b2   : > { %v2657_v20 = vadd.f32 %v1711_v19, %v1311_v16  ;;  %v1713_v21 = vpop.f32.mrb[6].mxu1 }
 0x3b3   : > { %vm1716_vm7 = vcmp.gt.f32.partialorder %v2656_v18, 0.0  ;;  %v1718_v22 = vmul.f32 0.01, %v2656_v18  ;;  %v1714_v23 = vpop.f32.mrb[7].mxu1 }
 0x3b4   : > { %vm1717_vm8 = vcmp.gt.f32.partialorder %v2657_v20, 0.0  ;;  %v1719_v24 = vmul.f32 0.01, %v2657_v20 }
 0x3b5   : > { %v1720_v25 = vsel %vm1716_vm7, %v2656_v18, %v1718_v22 }
 0x3b6   : > { %v1721_v26 = vsel %vm1717_vm8, %v2657_v20, %v1719_v24  ;;  %v1722_v9 = vpack.c.bf16 %v1720_v25, %v1720_v25 }
 0x3b7   : > { %v1723_v27 = vpack.c.bf16 %v1721_v26, %v1721_v26 }
 0x3b9   : > { %1891 = vmatprep.mubr.bf16.mxu0 %v1723_v27 }
 0x3ba   : > { %1892 = vmatmul.mubr.bf16.vlgmr.msra.gmra.mrb[8].mxu0 %v1722_v9 }
 0x3bb   : > { %2611 = vmatpush3.bf16.msra.mxu0 %v2985_v28  ;;  %2626 = vmatprep.mubr.msk.bf16.mxu0 %vm3263_vm9, %v3262_v13 }
 0x3bc   : > { %2612 = vmatprep.subr.bf16.mxu0 %v3262_v13 }
 0x3bf   : > { %2613 = vmatpush3.bf16.msra.mxu0 %v2986_v11 }
 0x3c0   : > { %2614 = vmatprep.subr.bf16.mxu0 %v3262_v13 }
 0x3c3   : > { %2615 = vmatpush3.bf16.msra.mxu0 %v2987_v29 }
 0x3c4   : > { %2616 = vmatprep.subr.bf16.mxu0 %v3262_v13 }
 0x3c7   : > { %2617 = vmatpush3.bf16.msra.mxu0 %v2988_v30 }
 0x3c8   : > { %2618 = vmatprep.subr.bf16.mxu0 %v3262_v13 }
 0x3cb   : > { %2619 = vmatpush3.bf16.msra.mxu0 %v2989_v31 }
 0x3cc   : > { %2620 = vmatprep.subr.bf16.mxu0 %v3262_v13 }
 0x3cf   : > { %2621 = vmatpush3.bf16.msra.mxu0 %v2990_v32 }
 0x3d0   : > { %2622 = vmatprep.subr.bf16.mxu0 %v3262_v13 }
 0x3d3   : > { %2623 = vmatpush3.bf16.msra.mxu0 %v2991_v33 }
 0x3d4   : > { %2624 = vmatprep.subr.bf16.mxu0 %v3262_v13 }
 0x3d7   : > { %2625 = vmatpush3.bf16.msra.mxu0 %v2992_v34 }
 0x3d8   : > { %2630 = vmatprep.subr.bf16.mxu0 %v3262_v13 }
 0x48d   : > { %v2585_v35 = vpop.f32.mrb[8].mxu0 }
 0x48e   : > { %v2586_v37 = vpop.f32.mrb[9].mxu0 }
 0x48f   : > { %v2587_v38 = vadd.f32 %v2586_v37, %v2585_v35  ;;  %v2588_v39 = vpop.f32.mrb[10].mxu0 }
 0x490   : > { %v2589_v40 = vpop.f32.mrb[11].mxu0 }
 0x491   : > { %v1894_v41 = vadd.f32 %v2587_v38, %v2528_v36 }
 0x493   : > { %vm1899_vm10 = vcmp.gt.f32.partialorder %v1894_v41, 0.0  ;;  %v1900_v42 = vmul.f32 0.01, %v1894_v41 }
 0x495   : > { %v1901_v43 = vsel %vm1899_vm10, %v1894_v41, %v1900_v42 }
 0x496   : > { %v1902_v45 = vpack.c.bf16 %v1901_v43, %v1901_v43 }
 0x498   : > { %2627 = vmatmul.mubr.bf16.vlgmr.msra.gmra.mrb[12].mxu0 %v1902_v45 }
 0x499   : > { %2631 = vmatpush3.bf16.msra.mxu0 %v2993_v44  ;;  %2638 = vmatprep.mubr.msk.bf16.mxu0 %vm3263_vm9, %v3262_v13 }
 0x49a   : > { %2632 = vmatprep.subr.bf16.mxu0 %v3262_v13 }
 0x49d   : > { %2633 = vmatpush3.bf16.msra.mxu0 %v2994_v46 }
 0x49e   : > { %2634 = vmatprep.subr.bf16.mxu0 %v3262_v13 }
 0x4a1   : > { %2635 = vmatpush3.bf16.msra.mxu0 %v2995_v47 }
 0x4a2   : > { %2636 = vmatprep.subr.bf16.mxu0 %v3262_v13 }
 0x4a5   : > { %2637 = vmatpush3.bf16.msra.mxu0 %v2996_v48 }
 0x4a6   : > { %2642 = vmatprep.subr.bf16.mxu0 %v3262_v13 }
 0x56b   : > { %v2008_v50 = vpop.f32.mrb[12].mxu0 }
 0x56c   : > { %v2009_v51 = vadd.f32 %v2545_v49, %v2008_v50  ;;  %v2628_v52 = vpop.f32.mrb[13].mxu0 }
 0x56d   : > { %v2011_v53 = vpop.f32.mrb[14].mxu0 }
 0x56e   : > { %vm2014_vm11 = vcmp.gt.f32.partialorder %v2009_v51, 0.0  ;;  %v2015_v54 = vmul.f32 0.01, %v2009_v51  ;;  %v2629_v55 = vpop.f32.mrb[15].mxu0 }
 0x570   : > { %v2016_v56 = vsel %vm2014_vm11, %v2009_v51, %v2015_v54 }
 0x571   : > { %v2017_v57 = vpack.c.bf16 %v2016_v56, %v2016_v56 }
 0x573   : > { %2639 = vmatmul.mubr.msk.bf16.vlgmr.msra.gmra.mrb[16].mxu0 %vm2057_vm12, %v2017_v57 }
 0x574   : > { %2646 = vmatprep.mubr.msk.bf16.mxu0 %vm3263_vm9, %v3262_v13  ;;  %2643 = vmatpush3.bf16.msra.mxu0 %v2997_v58 }
 0x575   : > { %2644 = vmatprep.subr.bf16.mxu0 %v3262_v13 }
 0x578   : > { %2645 = vmatpush3.bf16.msra.mxu0 %v2998_v59 }
 0x579   : > { %2650 = vmatprep.subr.bf16.mxu0 %v3262_v13 }
 0x646   : > { %v2095_v61 = vpop.f32.mrb[16].mxu0 }
 0x647   : > { %v2096_v62 = vadd.f32 %v2554_v60, %v2095_v61  ;;  %v2640_v63 = vpop.f32.mrb[17].mxu0 }
 0x648   : > { %v2098_v0 = vpop.f32.mrb[18].mxu0 }
 0x649   : > { %vm2101_vm13 = vcmp.gt.f32.partialorder %v2096_v62, 0.0  ;;  %v2102_v1 = vmul.f32 0.01, %v2096_v62  ;;  %v2641_v2 = vpop.f32.mrb[19].mxu0 }
 0x64b   : > { %v2103_v3 = vsel %vm2101_vm13, %v2096_v62, %v2102_v1 }
 0x64c   : > { %v2104_v8 = vpack.c.bf16 %v2103_v3, %v2103_v3 }
 0x64e   : > { %2647 = vmatmul.mubr.msk.bf16.vlgmr.msra.gmra.mrb[20].mxu0 %vm681_vm0, %v2104_v8  ;;  %vm2249_vm0 = vcmask 7168  }
 0x64f   : > { %2652 = vmatprep.mubr.msk.bf16.mxu0 %vm3263_vm9, %v3262_v13  ;;  %2651 = vmatpush3.bf16.msra.mxu0 %v2999_v4  ;;  %v2564_v13 = vld [vmem:[%s3841_s24] ss:$0 sm:$0xff] }
 0x721   : > { %v2165_v6 = vpop.f32.mrb[20].mxu0 }
 0x722   : > { %v2166_v7 = vadd.f32 %v2560_v5, %v2165_v6  ;;  %v2648_v10 = vpop.f32.mrb[21].mxu0 }
 0x723   : > { %v2168_v12 = vpop.f32.mrb[22].mxu0 }
 0x724   : > { %vm2171_vm14 = vcmp.gt.f32.partialorder %v2166_v7, 0.0  ;;  %v2172_v14 = vmul.f32 0.01, %v2166_v7  ;;  %v2649_v15 = vpop.f32.mrb[23].mxu0 }
 0x726   : > { %v2173_v16 = vsel %vm2171_vm14, %v2166_v7, %v2172_v14 }
 0x727   : > { %v2174_v17 = vpack.c.bf16 %v2173_v16, %v2173_v16 }
 0x729   : > { %2653 = vmatmul.mubr.msk.bf16.vlgmr.msra.gmra.mrb[24].mxu0 %vm2190_vm15, %v2174_v17 }
 0x7fc   : > { %v2228_v18 = vpop.f32.mrb[24].mxu0 }
 0x7fd   : > { %v2229_v19 = vadd.f32 %v2564_v13, %v2228_v18  ;;  %v2654_v20 = vpop.f32.mrb[25].mxu0 }
 0x7fe   : > { %v2231_v21 = vpop.f32.mrb[26].mxu0 }
 0x7ff   : > { %2235 = vrot.lane.b32.xlu0 %v2229_v19, %s3264_s29  ;;  %v2655_v22 = vpop.f32.mrb[27].mxu0 }
 0x871   : > { %v2236_v23 = vpop.permute.xlu0 %2235 }
 0x872   : > { %v2238_v24 = vsub.f32 %v2229_v19, %v2236_v23 }
 0x874   : > { %v2239_v25 = vmul.f32 1.442695, %v2238_v24 }
 0x876   : > { %3000 = vpow2.f32 %v2239_v25 }
 0x880   : > { %v3001_v26 = vpop.eup %3000 }
 0x881   : > { %v2241_v27 = vadd.f32 1.0, %v3001_v26 }
 0x883   : > { %3002 = vrcp.f32 %v2241_v27 }
 0x88d   : > { %v3003_v28 = vpop.eup %3002 }
 0x88e   : > { %2246 = vrot.lane.b32.xlu0 %v3003_v28, %s3265_s15  ;;  %v2244_v9 = vsub.f32 1.0, %v3003_v28 }
 0x900   : > { %v2247_v11 = vpop.permute.xlu0 %2246 }
 0x901   : > { %v2250_v29 = vsel %vm2249_vm0, %v2247_v11, %v2244_v9 }
 0x902   : > { %2252 = vst.msk [vmem:[%s642_s16] sm:$0xff] %vm2251_vm1, %v2250_v29 }
 0x903 PF: > { %p30_p0 = scmp.ge.s32.totalorder %s3526_s18, 4   ;;  %s3843_s24 = smov %s3240_s25 }
 0x904   : > { %s3844_s25 = smov %s3244_s26  ;;  %s3845_s26 = smov %s3538_s21 }
 0x905   : > { %s3846_s27 = smov %s3526_s18  ;;  %32 = sbr.rel (!%p30_p0) target bundleno = 16 (0x10), region = 152 }
 0x90c   :  { %2272 = vsyncpa [#allocation3], 1 }
 0x90d   :  { %2274 = vsyncpa [#allocation3 + $0x1], 1 }
 0x90e   :  { %2275 = vsyncpa [#allocation5], 1 }
 0x90f   :  { %2276 = vsyncpa [#allocation8], 1 }
 0x910   :  { %2277 = vsyncpa [#allocation11], 1 }

</bundles_post_ra>
